<compile_context>
chip_gen: v6e
topology: v6e:2x2x1
jax: 0.10.0
libtpu: 0.0.40
codegen_flags: <defaults>
</compile_context>

<pallas_src>
import math

import jax
import jax.numpy as jnp
import numpy as np
from jax.experimental import pallas as pl
from jax.experimental.pallas import tpu as pltpu

EMBED_SIZE = 768
PATCH_RES = 16
IN_CHANNELS = 3
PATCH_DIM = IN_CHANNELS * PATCH_RES * PATCH_RES  # 768


def _patch_embed_kernel(patches_ref, w_ref, b_ref, cls_ref, pos0_ref, posr_ref, o_ref):
    # patches_ref: (Bb, N, PD) bf16      w_ref: (PD, E) bf16
    # b_ref / cls_ref / pos0_ref: (1, E) f32      posr_ref: (N, E) f32
    # o_ref: (Bb, N+1, E) f32
    Bb, N, PD = patches_ref.shape
    E = w_ref.shape[1]

    # Patch projection: one big lane-dense matmul (bf16 operands, f32 accumulate).
    patches = patches_ref[...].reshape(Bb * N, PD)
    proj = jnp.dot(patches, w_ref[...], preferred_element_type=jnp.float32)
    proj = proj + b_ref[...]                                  # (Bb*N, E) + (1, E)
    proj = proj.reshape(Bb, N, E) + posr_ref[...][None]       # + pos_embed[1:]

    # Class-token row (+ pos_embed[0]) goes to sequence position 0.
    cls_row = cls_ref[...] + pos0_ref[...]                    # (1, E)
    o_ref[:, 0:1, :] = jnp.broadcast_to(cls_row[None, :, :], (Bb, 1, E)).astype(o_ref.dtype)
    o_ref[:, 1:, :] = proj.astype(o_ref.dtype)


def patch_embedding_pallas(x, conv_w, conv_b, class_embed, position_embed, *, block_b=1):
    """x: (B, C, H, W) f32. conv_w: (E, C, P, P) (PyTorch OIHW), conv_b: (E,),
       class_embed: (1, 1, E), position_embed: (1, N+1, E)."""
    B, C, H, W = x.shape
    P = PATCH_RES
    E = EMBED_SIZE
    assert C == IN_CHANNELS
    assert H % P == 0 and W % P == 0, "image size must be divisible by patch size"
    Hp, Wp = H // P, W // P
    N = Hp * Wp
    PD = C * P * P
    assert position_embed.shape == (1, N + 1, E)
    assert B % block_b == 0

    # --- wrapper-side layout plumbing (no compute) ---
    # Space-to-depth patch extraction: (B, C, H, W) -> (B, N, C*P*P),
    # patch feature order (c, ph, pw) matches conv_w.reshape(E, C*P*P).
    patches = x.reshape(B, C, Hp, P, Wp, P).transpose(0, 2, 4, 1, 3, 5).reshape(B, N, PD)
    patches = patches.astype(jnp.bfloat16)                      # bf16 MXU operand
    w_t = conv_w.reshape(E, PD).T.astype(jnp.bfloat16)           # (PD, E) bf16
    bias2 = conv_b.reshape(1, E).astype(jnp.float32)
    cls2 = class_embed.reshape(1, E).astype(jnp.float32)
    pos0 = position_embed[0, 0:1, :].astype(jnp.float32)         # (1, E)
    posr = position_embed[0, 1:, :].astype(jnp.float32)          # (N, E)

    grid_spec = pltpu.PrefetchScalarGridSpec(
        num_scalar_prefetch=0,
        grid=(B // block_b,),
        in_specs=[
            pl.BlockSpec((block_b, N, PD), lambda b: (b, 0, 0)),   # patches (per batch block)
            pl.BlockSpec((PD, E), lambda b: (0, 0)),               # projection weight (resident)
            pl.BlockSpec((1, E), lambda b: (0, 0)),                # bias
            pl.BlockSpec((1, E), lambda b: (0, 0)),                # class token
            pl.BlockSpec((1, E), lambda b: (0, 0)),                # pos_embed[0]
            pl.BlockSpec((N, E), lambda b: (0, 0)),                # pos_embed[1:]
        ],
        out_specs=pl.BlockSpec((block_b, N + 1, E), lambda b: (b, 0, 0)),
    )

    flops = 2 * B * N * PD * E
    bytes_accessed = (patches.size * 2 + w_t.size * 2
                      + (bias2.size + cls2.size + pos0.size + posr.size) * 4
                      + B * (N + 1) * E * 4)

    return pl.pallas_call(
        _patch_embed_kernel,
        out_shape=jax.ShapeDtypeStruct((B, N + 1, E), jnp.float32),
        grid_spec=grid_spec,
        compiler_params=pltpu.CompilerParams(
            dimension_semantics=("parallel",),
            vmem_limit_bytes=32 * 1024 * 1024,
        ),
        cost_estimate=pl.CostEstimate(flops=flops, transcendentals=0,
                                      bytes_accessed=bytes_accessed),
    )(patches, w_t, bias2, cls2, pos0, posr)


def patch_embedding_reference(x, conv_w, conv_b, class_embed, position_embed):
    """Pure-JAX reference matching the PyTorch forward (independent conv path)."""
    B = x.shape[0]
    y = jax.lax.conv_general_dilated(
        x, conv_w, window_strides=(PATCH_RES, PATCH_RES), padding="VALID",
        dimension_numbers=("NCHW", "OIHW", "NCHW"))              # (B, E, Hp, Wp)
    y = y + conv_b.reshape(1, -1, 1, 1)
    B_, E, Hp, Wp = y.shape
    y = y.reshape(B_, E, Hp * Wp).transpose(0, 2, 1)              # (B, N, E)
    cls = jnp.broadcast_to(class_embed, (B_, 1, E))
    return jnp.concatenate([cls, y], axis=1) + position_embed


if __name__ == "__main__":
    # Small, module-consistent shapes: batch=2, 3 channels, 64x64 image
    # (divisible by PATCH_RES=16 -> N=16 patches, sequence length 17, embed 768).
    B, C, IMG = 2, 3, 64
    N = (IMG // PATCH_RES) ** 2
    E = EMBED_SIZE

    key = jax.random.PRNGKey(0)
    kx, kw, kb, kp, kc = jax.random.split(key, 5)

    x = jax.random.normal(kx, (B, C, IMG, IMG), dtype=jnp.float32)
    conv_w = jax.random.normal(kw, (E, C, PATCH_RES, PATCH_RES),
                               dtype=jnp.float32) * (1.0 / math.sqrt(PATCH_DIM))
    conv_b = 0.01 * jax.random.normal(kb, (E,), dtype=jnp.float32)
    # Module initializes these to ones; perturb slightly so indexing bugs are caught.
    class_embed = jnp.ones((1, 1, E), jnp.float32) + 0.01 * jax.random.normal(kc, (1, 1, E))
    position_embed = jnp.ones((1, N + 1, E), jnp.float32) + 0.01 * jax.random.normal(kp, (1, N + 1, E))

    out = jax.block_until_ready(
        patch_embedding_pallas(x, conv_w, conv_b, class_embed, position_embed, block_b=1))
    ref = jax.block_until_ready(
        patch_embedding_reference(x, conv_w, conv_b, class_embed, position_embed))

    # bf16 matmul operands with f32 accumulation -> slightly looser tolerance.
    np.testing.assert_allclose(np.asarray(out), np.asarray(ref), rtol=2e-2, atol=2e-2)
    print("KERNEL_OK")
</pallas_src>

<mosaic_0001>
module attributes {stable_mosaic.version = 11 : i64} {
  func.func @_patch_embed_kernel(%arg0: i32, %arg1: memref<1x16x768xbf16, #tpu.memory_space<vmem>>, %arg2: memref<768x768xbf16, #tpu.memory_space<vmem>>, %arg3: memref<1x768xf32, #tpu.memory_space<vmem>>, %arg4: memref<1x768xf32, #tpu.memory_space<vmem>>, %arg5: memref<1x768xf32, #tpu.memory_space<vmem>>, %arg6: memref<16x768xf32, #tpu.memory_space<vmem>>, %arg7: memref<1x17x768xf32, #tpu.memory_space<vmem>>) attributes {dimension_semantics = [#tpu.dimension_semantics<parallel>], iteration_bounds = array<i64: 2>, scalar_prefetch = 0 : i64, scratch_operands = 0 : i64, tpu.core_type = #tpu.core_type<tc>, window_params = [{transform_indices = @transform_0, window_bounds = array<i64: 1, 16, 768>}, {pipeline_mode = #tpu.pipeline_mode<synchronous>, transform_indices = @transform_1, window_bounds = array<i64: 768, 768>}, {pipeline_mode = #tpu.pipeline_mode<synchronous>, transform_indices = @transform_2, window_bounds = array<i64: 1, 768>}, {pipeline_mode = #tpu.pipeline_mode<synchronous>, transform_indices = @transform_3, window_bounds = array<i64: 1, 768>}, {pipeline_mode = #tpu.pipeline_mode<synchronous>, transform_indices = @transform_4, window_bounds = array<i64: 1, 768>}, {pipeline_mode = #tpu.pipeline_mode<synchronous>, transform_indices = @transform_5, window_bounds = array<i64: 16, 768>}, {transform_indices = @transform_6, window_bounds = array<i64: 1, 17, 768>}]} {
    %c0 = arith.constant 0 : index
    %c0_0 = arith.constant 0 : index
    %c0_1 = arith.constant 0 : index
    %0 = vector.load %arg1[%c0, %c0_0, %c0_1] : memref<1x16x768xbf16, #tpu.memory_space<vmem>>, vector<1x16x768xbf16>
    %1 = vector.shape_cast %0 : vector<1x16x768xbf16> to vector<16x768xbf16>
    %c0_2 = arith.constant 0 : index
    %c0_3 = arith.constant 0 : index
    %2 = vector.load %arg2[%c0_2, %c0_3] : memref<768x768xbf16, #tpu.memory_space<vmem>>, vector<768x768xbf16>
    %cst = arith.constant dense<0.000000e+00> : vector<16x768xf32>
    %3 = tpu.matmul %1, %2, %cst {dimension_numbers = #tpu.dot_dimension_numbers<[1], [0], [0], [1], [0, 0, 1, 1], [], []>} : vector<16x768xbf16>, vector<768x768xbf16>, vector<16x768xf32> -> vector<16x768xf32>
    %c0_4 = arith.constant 0 : index
    %c0_5 = arith.constant 0 : index
    %4 = vector.load %arg3[%c0_4, %c0_5] : memref<1x768xf32, #tpu.memory_space<vmem>>, vector<1x768xf32>
    %5 = vector.broadcast %4 : vector<1x768xf32> to vector<16x768xf32>
    %6 = arith.addf %3, %5 : vector<16x768xf32>
    %7 = vector.shape_cast %6 : vector<16x768xf32> to vector<1x16x768xf32>
    %c0_6 = arith.constant 0 : index
    %c0_7 = arith.constant 0 : index
    %8 = vector.load %arg6[%c0_6, %c0_7] : memref<16x768xf32, #tpu.memory_space<vmem>>, vector<16x768xf32>
    %9 = vector.shape_cast %8 : vector<16x768xf32> to vector<1x16x768xf32>
    %10 = arith.addf %7, %9 : vector<1x16x768xf32>
    %c0_8 = arith.constant 0 : index
    %c0_9 = arith.constant 0 : index
    %11 = vector.load %arg4[%c0_8, %c0_9] : memref<1x768xf32, #tpu.memory_space<vmem>>, vector<1x768xf32>
    %c0_10 = arith.constant 0 : index
    %c0_11 = arith.constant 0 : index
    %12 = vector.load %arg5[%c0_10, %c0_11] : memref<1x768xf32, #tpu.memory_space<vmem>>, vector<1x768xf32>
    %13 = arith.addf %11, %12 : vector<1x768xf32>
    %14 = vector.shape_cast %13 : vector<1x768xf32> to vector<1x1x768xf32>
    %c0_12 = arith.constant 0 : index
    %c0_13 = arith.constant 0 : index
    %c0_14 = arith.constant 0 : index
    %15 = vector.load %arg7[%c0_12, %c0_13, %c0_14] : memref<1x17x768xf32, #tpu.memory_space<vmem>>, vector<1x1x768xf32>
    tpu.vector_store %arg7[%c0_12, %c0_13, %c0_14], %14 {strides = array<i32>} : memref<1x17x768xf32, #tpu.memory_space<vmem>>, vector<1x1x768xf32>,
    %c0_15 = arith.constant 0 : index
    %c1 = arith.constant 1 : index
    %c0_16 = arith.constant 0 : index
    %16 = vector.load %arg7[%c0_15, %c1, %c0_16] : memref<1x17x768xf32, #tpu.memory_space<vmem>>, vector<1x16x768xf32>
    tpu.vector_store %arg7[%c0_15, %c1, %c0_16], %10 {strides = array<i32>} : memref<1x17x768xf32, #tpu.memory_space<vmem>>, vector<1x16x768xf32>,
    return
  }
  func.func @transform_0(%arg0: i32) -> (i32, i32, i32) {
    %c0_i32 = arith.constant 0 : i32
    %c0_i32_0 = arith.constant 0 : i32
    %c0_i32_1 = arith.constant 0 : i32
    return %arg0, %c0_i32, %c0_i32_0 : i32, i32, i32
  }
  func.func @transform_1(%arg0: i32) -> (i32, i32) {
    %c0_i32 = arith.constant 0 : i32
    %c0_i32_0 = arith.constant 0 : i32
    %c0_i32_1 = arith.constant 0 : i32
    return %c0_i32, %c0_i32_0 : i32, i32
  }
  func.func @transform_2(%arg0: i32) -> (i32, i32) {
    %c0_i32 = arith.constant 0 : i32
    %c0_i32_0 = arith.constant 0 : i32
    %c0_i32_1 = arith.constant 0 : i32
    return %c0_i32, %c0_i32_0 : i32, i32
  }
  func.func @transform_3(%arg0: i32) -> (i32, i32) {
    %c0_i32 = arith.constant 0 : i32
    %c0_i32_0 = arith.constant 0 : i32
    %c0_i32_1 = arith.constant 0 : i32
    return %c0_i32, %c0_i32_0 : i32, i32
  }
  func.func @transform_4(%arg0: i32) -> (i32, i32) {
    %c0_i32 = arith.constant 0 : i32
    %c0_i32_0 = arith.constant 0 : i32
    %c0_i32_1 = arith.constant 0 : i32
    return %c0_i32, %c0_i32_0 : i32, i32
  }
  func.func @transform_5(%arg0: i32) -> (i32, i32) {
    %c0_i32 = arith.constant 0 : i32
    %c0_i32_0 = arith.constant 0 : i32
    %c0_i32_1 = arith.constant 0 : i32
    return %c0_i32, %c0_i32_0 : i32, i32
  }
  func.func @transform_6(%arg0: i32) -> (i32, i32, i32) {
    %c0_i32 = arith.constant 0 : i32
    %c0_i32_0 = arith.constant 0 : i32
    %c0_i32_1 = arith.constant 0 : i32
    return %arg0, %c0_i32, %c0_i32_0 : i32, i32, i32
  }
}

</mosaic_0001>

<bundles_post_ra>
// kernel: tpu_custom_call.1
= control target key start
LH: loop header
LB: loop body
LE: loop exit
PB: predicated region body
PF: predicated region fallthrough
CT: control target
= control target key end

     0   :  { %11 = vsyncpa [#allocation3], 0  ;;  %s4108_s0 = inlined_call_operand.hbm [shape: bf16[2,16,768], index: 0, kind: input, shape index: {}]   ;;  %s4109_s1 = inlined_call_operand.hbm [shape: bf16[768,768], index: 1, kind: input, shape index: {}]   ;;  %s4110_s2 = inlined_call_operand.hbm [shape: f32[1,768], index: 2, kind: input, shape index: {}]   ;;  %s4111_s3 = inlined_call_operand.hbm [shape: f32[1,768], index: 3, kind: input, shape index: {}]   ;;  %s4112_s4 = inlined_call_operand.hbm [shape: f32[1,768], index: 4, kind: input, shape index: {}]   ;;  %s4113_s5 = inlined_call_operand.hbm [shape: f32[16,768], index: 5, kind: input, shape index: {}]   ;;  %s4114_s6 = inlined_call_operand.vmem [shape: f32[2,17,768], index: 6, kind: output, shape index: {}]  }
   0x1   :  { %13 = vsyncpa [#allocation3 + $0x1], 0 }
   0x2   :  { %14 = vsyncpa [#allocation5], 0 }
   0x3   :  { %15 = vsyncpa [#allocation8], 0 }
   0x4   :  { %16 = vsyncpa [#allocation11], 0  ;;  %s3844_s21 = smov 0   ;;  %s3846_s22 = smov 0  }
   0x5   :  { %s3848_s23 = smov 0   ;;  %s3850_s24 = smov 0  }
   0x6 LB: > { %s3799_s25 = smov [#allocation4]   ;;  %s3865_s27 = sadd.s32 4294967295, %s3797_s24   ;;  %s3797_s24 = sphi %s3850_s24, %s4135_s24   ;;  %s3793_s23 = sphi %s3848_s23, %s4134_s23   ;;  %s3789_s22 = sphi %s3846_s22, %s4133_s22   ;;  %s3785_s21 = sphi %s3844_s21, %s4132_s21  }
   0x7   : > { %s196_s26 = sshll.u32 %s3799_s25, 4  ;;  %p2738_p0 = scmp.ge.s32.totalorder %s3797_s24, 1  ;;  %s197_s26 = int_to_ptr.vmem [resolvable:$true] %s196_s26 }
   0x8   : > { %p4115_p1 = scmp.eq.s32.totalorder %s3865_s27, 0  ;;  %p184_p2 = scmp.lt.s32.totalorder %s3797_s24, 3 }
   0x9   : > { %s3800_s29 = smov [#allocation7]   ;;  %s3801_s8 = smov [#allocation6]  }
   0xa   : > { %p3870_p3 = pnand %p2738_p0, %p184_p2  ;;  %s221_s30 = sshll.u32 %s3800_s29, 4  ;;  %s222_s30 = int_to_ptr.vmem [resolvable:$true] %s221_s30 }
   0xb   : > { %s210_s9 = sshll.u32 %s3801_s8, 4  ;;  %s3604_s11 = scalar_lea.vmem %s197_s26, 36864  ;;  %s3882_s9 = int_to_ptr.vmem [resolvable:$true] %s210_s9 }
   0xc   : > { %s4118_s28 = scalar_select %p3870_p3, 1, 0 }
   0xd   : > { %p3075_p4 = pneg %p3870_p3  ;;  %p3605_p7 = scmp.ne.s32.totalorder %s197_s26, %s3604_s11 }
   0xe   : > { %p3612_p10 = scmp.lt.s32.totalorder %s197_s26, %s197_s26  ;;  %p3613_p11 = scmp.lt.s32.totalorder %s3604_s11, %s3604_s11 }
   0xf   : > { %p3878_p5 = pnand %p3075_p4, %p4115_p1 }
  0x10   : > { %p3614_p12 = por %p3613_p11, %p3612_p10 }
  0x11   : > { %p3886_p6 = pneg %p3878_p5 }
  0x13   : > { %p3607_p8 = pnand %p3605_p7, %p3886_p6 }
  0x15   : > { %p3608_p9 = pneg %p3607_p8 }
  0x17   : > { %p3615_p13 = pnand %p3614_p12, %p3608_p9 }
  0x19   : > { %3618 = shalt.err (!%p3615_p13)
}
  0x1a   : > { %s3802_s12 = smov 384   ;;  %s3803_s13 = smov 24  }
  0x1b   : > { %3078 = dma.hbm_to_vmem [thread:$0]  (!%p3878_p5), %s4109_s1, 36864, %s197_s26, [#allocation5], %s3802_s12, %s3802_s12, %s3803_s13  }
  0x1c   : > { %s3630_s16 = scalar_lea.vmem %s222_s30, 96  ;;  %p3638_p7 = scmp.lt.s32.totalorder %s222_s30, %s222_s30 }
  0x1d   : > { %p3631_p0 = scmp.ne.s32.totalorder %s222_s30, %s3630_s16  ;;  %p3639_p8 = scmp.lt.s32.totalorder %s3630_s16, %s3630_s16 }
  0x1f   : > { %p3633_p2 = pnand %p3631_p0, %p3886_p6  ;;  %p3640_p9 = por %p3639_p8, %p3638_p7 }
  0x21   : > { %p3634_p4 = pneg %p3633_p2 }
  0x23   : > { %p3641_p10 = pnand %p3640_p9, %p3634_p4 }
  0x25   : > { %3644 = shalt.err (!%p3641_p10)
}
  0x26   : > { %3084 = dma.hbm_to_vmem [thread:$0]  (!%p3878_p5), %s4111_s3, 96, %s222_s30, [#allocation8]  }
  0x27   : > { %s3656_s19 = scalar_lea.vmem %s3882_s9, 96  ;;  %p3664_p0 = scmp.lt.s32.totalorder %s3882_s9, %s3882_s9 }
  0x28   : > { %p3657_p11 = scmp.ne.s32.totalorder %s3882_s9, %s3656_s19  ;;  %p3665_p2 = scmp.lt.s32.totalorder %s3656_s19, %s3656_s19 }
  0x2a   : > { %p3659_p12 = pnand %p3657_p11, %p3886_p6  ;;  %p3666_p4 = por %p3665_p2, %p3664_p0 }
  0x2c   : > { %p3660_p13 = pneg %p3659_p12 }
  0x2e   : > { %p3667_p7 = pnand %p3666_p4, %p3660_p13 }
  0x30   : > { %3670 = shalt.err (!%p3667_p7)
}
  0x31   : > { %3081 = dma.hbm_to_vmem [thread:$0]  (!%p3878_p5), %s4110_s2, 96, %s3882_s9, [#allocation5]  }
  0x32   : > { %s3804_s26 = smov [#allocation9]   ;;  %s3805_s30 = smov [#allocation10]  }
  0x33   : > { %s232_s29 = sshll.u32 %s3804_s26, 4  ;;  %s242_s8 = sshll.u32 %s3805_s30, 4  ;;  %s233_s29 = int_to_ptr.vmem [resolvable:$true] %s232_s29  ;;  %s243_s8 = int_to_ptr.vmem [resolvable:$true] %s242_s8 }
  0x34   : > { %s3682_s11 = scalar_lea.vmem %s233_s29, 96  ;;  %p3690_p11 = scmp.lt.s32.totalorder %s233_s29, %s233_s29 }
  0x35   : > { %p3683_p8 = scmp.ne.s32.totalorder %s233_s29, %s3682_s11  ;;  %p3691_p12 = scmp.lt.s32.totalorder %s3682_s11, %s3682_s11 }
  0x37   : > { %p3685_p9 = pnand %p3683_p8, %p3886_p6  ;;  %p3692_p13 = por %p3691_p12, %p3690_p11 }
  0x39   : > { %p3686_p10 = pneg %p3685_p9 }
  0x3b   : > { %p3693_p0 = pnand %p3692_p13, %p3686_p10 }
  0x3d   : > { %3696 = shalt.err (!%p3693_p0)
}
  0x3e   : > { %3087 = dma.hbm_to_vmem [thread:$0]  (!%p3878_p5), %s4112_s4, 96, %s233_s29, [#allocation8]  }
  0x3f   : > { %s3708_s9 = scalar_lea.vmem %s243_s8, 1536  ;;  %p3716_p8 = scmp.lt.s32.totalorder %s243_s8, %s243_s8 }
  0x40   : > { %p3709_p2 = scmp.ne.s32.totalorder %s243_s8, %s3708_s9  ;;  %p3717_p9 = scmp.lt.s32.totalorder %s3708_s9, %s3708_s9 }
  0x42   : > { %p3711_p4 = pnand %p3709_p2, %p3886_p6  ;;  %p3718_p1 = por %p3717_p9, %p3716_p8 }
  0x44   : > { %p3712_p7 = pneg %p3711_p4 }
  0x46   : > { %p3719_p3 = pnand %p3718_p1, %p3712_p7 }
  0x48   : > { %3722 = shalt.err (!%p3719_p3)
}
  0x49   : > { %s3806_s16 = smov 768   ;;  %s3807_s10 = smov 48  }
  0x4a   : > { %3090 = dma.hbm_to_vmem [thread:$0]  (!%p3878_p5), %s4113_s5, 1536, %s243_s8, [#allocation11], %s3806_s16, %s3806_s16, %s3807_s10  }
  0x4b   : > { %s3934_s19 = sadd.s32 1, %s3797_s24   ;;  %s29_s25 = sadd.s32 1, %s3793_s23 }
  0x4c   : > { %s26_s20 = ssub.s32 %s3797_s24, %s3934_s19  ;;  %p36_p3 = scmp.ne.s32.totalorder %s3793_s23, %s3789_s22 }
  0x4d   : > { %p27_p1 = scmp.eq.s32.totalorder %s26_s20, 0  ;;  %p37_p6 = scmp.eq.s32.totalorder %s3797_s24, 0 }
  0x4e   : > { %p42_p10 = scmp.ne.s32.totalorder %s3789_s22, %s3785_s21  ;;  %p4121_p12 = scmp.eq.s32.totalorder %s3865_s27, 0 }
  0x4f   : > { %s3945_s26 = scalar_select %p27_p1, %s3793_s23, %s29_s25  }
  0x50   : > { %p38_p11 = por %p37_p6, %p36_p3  ;;  %p3949_p13 = por %p4121_p12, %p42_p10 }
  0x51   : > { %p3100_p0 = scmp.lt.s32.totalorder %s3797_s24, 2  ;;  %s256_s7 = sand.u32 1, %s3793_s23  }
  0x52   : > { %s4122_s29 = scalar_select %p3949_p13, 1, 0 }
  0x53   : > { %s3049_s30 = smul.u32 48, %s256_s7  ;;  %p3956_p5 = pnand %p3100_p0, %p38_p11 }
  0x54   : > { %s3050_s8 = smul.u32 768, %s3797_s24  ;;  %s3967_s10 = scalar_lea.sflag [#allocation3], %s256_s7 }
  0x55   : > { %s260_s9 = scalar_lea.vmem [#allocation2], %s3049_s30  ;;  %p3725_p4 = pneg %p3956_p5 }
  0x56   : > { %s3963_s21 = scalar_lea.hbm %s4108_s0, %s3050_s8  ;;  %s267_s16 = sshll.u32 %s260_s9, 4  ;;  %s3965_s16 = int_to_ptr.vmem [resolvable:$true] %s267_s16 }
  0x57   : > { %s3723_s24 = scalar_lea.hbm %s3963_s21, 768  ;;  %s3728_s20 = scalar_lea.hbm %s4108_s0, 1536 }
  0x58   : > { %p3724_p2 = scmp.ne.s32.totalorder %s3963_s21, %s3723_s24  ;;  %p3729_p9 = scmp.lt.s32.totalorder %s3963_s21, %s4108_s0 }
  0x59   : > { %p3730_p1 = scmp.lt.s32.totalorder %s3728_s20, %s3723_s24 }
  0x5a   : > { %p3726_p7 = pnand %p3725_p4, %p3724_p2 }
  0x5b   : > { %p3731_p3 = por %p3730_p1, %p3729_p9 }
  0x5c   : > { %p3727_p8 = pneg %p3726_p7 }
  0x5e   : > { %p3732_p6 = pnand %p3731_p3, %p3727_p8 }
  0x60   : > { %3735 = shalt.err (!%p3732_p6)
}
  0x61   : > { %s3736_s7 = scalar_lea.vmem %s3965_s16, 768  ;;  %s3808_s30 = smov [#allocation2]  }
  0x62   : > { %p3737_p10 = scmp.ne.s32.totalorder %s3965_s16, %s3736_s7  ;;  %s3741_s14 = sshll.u32 %s3808_s30, 4  ;;  %s3742_s14 = int_to_ptr.vmem [resolvable:$false] %s3741_s14 }
  0x63   : > { %s3743_s15 = scalar_lea.vmem %s3742_s14, 1536  ;;  %p3744_p0 = scmp.lt.s32.totalorder %s3965_s16, %s3742_s14 }
  0x64   : > { %p3739_p11 = pnand %p3737_p10, %p3725_p4  ;;  %p3745_p2 = scmp.lt.s32.totalorder %s3743_s15, %s3736_s7 }
  0x66   : > { %p3740_p12 = pneg %p3739_p11  ;;  %p3746_p7 = por %p3745_p2, %p3744_p0 }
  0x68   : > { %p3747_p13 = pnand %p3746_p7, %p3740_p12 }
  0x6a   : > { %3750 = shalt.err (!%p3747_p13)
}
  0x6b   : > { %3094 = dma.hbm_to_vmem [thread:$0]  (!%p3956_p5), %s3963_s21, 768, %s3965_s16, %s3967_s10, %s3802_s12, %s3802_s12, %s3803_s13  }
  0x6c   : > { %p4124_p4 = scmp.ne.s32.totalorder %s4118_s28, 0 }
  0x6d   : > { %s281_s9 = sand.u32 (!%p4124_p4), 1, %s3789_s22   ;;  %p4125_p13 = scmp.ne.s32.totalorder (!%p4124_p4), %s4122_s29, 0 }
  0x6e   : > { %279 = sbr.rel (%p4124_p4) target bundleno = 654 (0x28e), region = 44  ;;  %s282_s17 = scalar_lea.sflag (!%p4124_p4), [#allocation3], %s281_s9 }
  0x6f   : > { %s3051_s24 = smul.u32 (!%p4124_p4), 48, %s281_s9 }
  0x71   : > { %s3994_s18 = scalar_lea.vmem (!%p4124_p4), [#allocation2], %s3051_s24 }
  0x73   : > { %3768 = dma.done.wait (%p4125_p13), %s282_s17, 768  }
  0x74   : > { %3770 = vsyncadd (%p4125_p13), %s282_s17, 4294966528  ;;  %p4126_p8 = scmp.eq.s32.totalorder %s3865_s27, 0 }
  0x76   : > { %3772 = dma.done.wait (%p4126_p8), [#allocation5], 36960   ;;  %p4127_p5 = pmov %p4126_p8 }
  0x78   : > { %3774 = vsyncadd (%p4127_p5), [#allocation5], 4294930336  ;;  %p4128_p9 = pmov %p4127_p5 }
  0x79   : > { %p4129_p1 = pmov %p4127_p5 }
  0x7a   : > { %3776 = dma.done.wait (%p4128_p9), [#allocation8], 192  }
  0x7b   : > { %3778 = vsyncadd (%p4129_p1), [#allocation8], 4294967104  ;;  %p4130_p3 = pmov %p4129_p1 }
  0x7c   : > { %p4131_p6 = pmov %p4129_p1 }
  0x7d   : > { %3780 = dma.done.wait (%p4130_p3), [#allocation11], 1536  }
  0x7e   : > { %3782 = vsyncadd (%p4131_p6), [#allocation11], 4294965760  ;;  %v3147_v0 = vld [vmem:[#allocation4 + $0x154] ss:$24 sps:$4 sm:$0xff]   ;;  %v3149_v1 = vld [vmem:[#allocation4 + $0x150] ss:$24 sps:$4 sm:$0xff]  }
  0x7f   : > { %2135 = vmatprep.subr.bf16.mxu0 %v3147_v0  ;;  %v3150_v2 = vld [vmem:[#allocation4 + $0x454] ss:$24 sps:$4 sm:$0xff]   ;;  %v3152_v3 = vld [vmem:[#allocation4 + $0x450] ss:$24 sps:$4 sm:$0xff]   ;;  %v3153_v4 = vld [vmem:[#allocation4 + $0x124] ss:$24 sps:$4 sm:$0xff]  }
  0x80   : > { %2136 = vmatpush1.bf16.msra.mxu0 %v3149_v1  ;;  %v3155_v5 = vld [vmem:[#allocation4 + $0x120] ss:$24 sps:$4 sm:$0xff]   ;;  %2178 = vmatprep.subr.bf16.mxu1 %v3150_v2  ;;  %v3156_v6 = vld [vmem:[#allocation4 + $0x424] ss:$24 sps:$4 sm:$0xff]   ;;  %v3159_v8 = vld [vmem:[#allocation4 + $0xf4] ss:$24 sps:$4 sm:$0xff]  }
  0x81   : > { %2179 = vmatpush1.bf16.msra.mxu1 %v3152_v3  ;;  %2137 = vmatprep.subr.bf16.mxu0 %v3153_v4  ;;  %v3158_v7 = vld [vmem:[#allocation4 + $0x420] ss:$24 sps:$4 sm:$0xff]   ;;  %v3161_v9 = vld [vmem:[#allocation4 + $0xf0] ss:$24 sps:$4 sm:$0xff]   ;;  %v3162_v10 = vld [vmem:[#allocation4 + $0x3f4] ss:$24 sps:$4 sm:$0xff]  }
  0x82   : > { %2180 = vmatprep.subr.bf16.mxu1 %v3156_v6  ;;  %v3165_v11 = vld [vmem:[#allocation4 + $0xc4] ss:$24 sps:$4 sm:$0xff]   ;;  %v3164_v12 = vld [vmem:[#allocation4 + $0x3f0] ss:$24 sps:$4 sm:$0xff]   ;;  %v3167_v14 = vld [vmem:[#allocation4 + $0xc0] ss:$24 sps:$4 sm:$0xff]  }
  0x83   : > { %v3168_v13 = vld [vmem:[#allocation4 + $0x3c4] ss:$24 sps:$4 sm:$0xff]   ;;  %v3171_v15 = vld [vmem:[#allocation4 + $0x94] ss:$24 sps:$4 sm:$0xff]   ;;  %v3170_v16 = vld [vmem:[#allocation4 + $0x3c0] ss:$24 sps:$4 sm:$0xff]  }
  0x84   : > { %2138 = vmatpush1.bf16.msra.mxu0 %v3155_v5  ;;  %v3174_v17 = vld [vmem:[#allocation4 + $0x394] ss:$24 sps:$4 sm:$0xff]   ;;  %v3173_v18 = vld [vmem:[#allocation4 + $0x90] ss:$24 sps:$4 sm:$0xff]   ;;  %v3177_v19 = vld [vmem:[#allocation4 + $0x64] ss:$24 sps:$4 sm:$0xff]  }
  0x85   : > { %2139 = vmatprep.subr.bf16.mxu0 %v3159_v8  ;;  %2181 = vmatpush1.bf16.msra.mxu1 %v3158_v7  ;;  %v3176_v20 = vld [vmem:[#allocation4 + $0x390] ss:$24 sps:$4 sm:$0xff]   ;;  %v3180_v21 = vld [vmem:[#allocation4 + $0x364] ss:$24 sps:$4 sm:$0xff]   ;;  %v3179_v22 = vld [vmem:[#allocation4 + $0x60] ss:$24 sps:$4 sm:$0xff]  }
  0x86   : > { %2182 = vmatprep.subr.bf16.mxu1 %v3162_v10  ;;  %v3183_v23 = vld [vmem:[#allocation4 + $0x34] ss:$24 sps:$4 sm:$0xff]   ;;  %v3182_v24 = vld [vmem:[#allocation4 + $0x360] ss:$24 sps:$4 sm:$0xff]   ;;  %v3185_v26 = vld [vmem:[#allocation4 + $0x30] ss:$24 sps:$4 sm:$0xff]  }
  0x87   : > { %v3186_v25 = vld [vmem:[#allocation4 + $0x334] ss:$24 sps:$4 sm:$0xff]   ;;  %v3189_v27 = vld [vmem:[#allocation4 + $0x4] ss:$24 sps:$4 sm:$0xff]   ;;  %v3188_v28 = vld [vmem:[#allocation4 + $0x330] ss:$24 sps:$4 sm:$0xff]  }
  0x88   : > { %2140 = vmatpush1.bf16.msra.mxu0 %v3161_v9  ;;  %v3192_v29 = vld [vmem:[#allocation4 + $0x304] ss:$24 sps:$4 sm:$0xff]   ;;  %v3191_v30 = vld [vmem:[#allocation4] ss:$24 sps:$4 sm:$0xff]   ;;  %v3195_v31 = vld [vmem:[#allocation4 + $0x2d4] ss:$24 sps:$4 sm:$0xff]  }
  0x89   : > { %2141 = vmatprep.subr.bf16.mxu0 %v3165_v11  ;;  %2183 = vmatpush1.bf16.msra.mxu1 %v3164_v12  ;;  %v3194_v32 = vld [vmem:[#allocation4 + $0x300] ss:$24 sps:$4 sm:$0xff]   ;;  %v3198_v33 = vld [vmem:[#allocation4 + $0x5d4] ss:$24 sps:$4 sm:$0xff]   ;;  %v3197_v34 = vld [vmem:[#allocation4 + $0x2d0] ss:$24 sps:$4 sm:$0xff]  }
  0x8a   : > { %2184 = vmatprep.subr.bf16.mxu1 %v3168_v13  ;;  %v3201_v35 = vld [vmem:[#allocation4 + $0x2a4] ss:$24 sps:$4 sm:$0xff]   ;;  %v3200_v36 = vld [vmem:[#allocation4 + $0x5d0] ss:$24 sps:$4 sm:$0xff]   ;;  %v3203_v38 = vld [vmem:[#allocation4 + $0x2a0] ss:$24 sps:$4 sm:$0xff]  }
  0x8b   : > { %v3204_v37 = vld [vmem:[#allocation4 + $0x5a4] ss:$24 sps:$4 sm:$0xff]   ;;  %v3207_v39 = vld [vmem:[#allocation4 + $0x274] ss:$24 sps:$4 sm:$0xff]   ;;  %v3206_v40 = vld [vmem:[#allocation4 + $0x5a0] ss:$24 sps:$4 sm:$0xff]  }
  0x8c   : > { %2142 = vmatpush1.bf16.msra.mxu0 %v3167_v14  ;;  %v3210_v41 = vld [vmem:[#allocation4 + $0x574] ss:$24 sps:$4 sm:$0xff]   ;;  %v3209_v42 = vld [vmem:[#allocation4 + $0x270] ss:$24 sps:$4 sm:$0xff]   ;;  %v3213_v43 = vld [vmem:[#allocation4 + $0x244] ss:$24 sps:$4 sm:$0xff]  }
  0x8d   : > { %2143 = vmatprep.subr.bf16.mxu0 %v3171_v15  ;;  %2185 = vmatpush1.bf16.msra.mxu1 %v3170_v16  ;;  %v3212_v44 = vld [vmem:[#allocation4 + $0x570] ss:$24 sps:$4 sm:$0xff]   ;;  %v3216_v45 = vld [vmem:[#allocation4 + $0x544] ss:$24 sps:$4 sm:$0xff]   ;;  %v3215_v46 = vld [vmem:[#allocation4 + $0x240] ss:$24 sps:$4 sm:$0xff]  }
  0x8e   : > { %2186 = vmatprep.subr.bf16.mxu1 %v3174_v17  ;;  %v3242_v47 = vld [vmem:[%s3994_s18 + $0x4] ss:$24 sps:$4 sm:$0xff]   ;;  %v3218_v49 = vld [vmem:[#allocation4 + $0x540] ss:$24 sps:$4 sm:$0xff]   ;;  %v3221_v52 = vld [vmem:[#allocation4 + $0x210] ss:$24 sps:$4 sm:$0xff]  }
  0x8f   : > { %v3219_v48 = vld [vmem:[#allocation4 + $0x214] ss:$24 sps:$4 sm:$0xff]   ;;  %2167 = vmatprep.mubr.bf16.mxu0 %v3242_v47  ;;  %v3225_v53 = vld [vmem:[#allocation4 + $0x1e4] ss:$24 sps:$4 sm:$0xff]   ;;  %v3224_v54 = vld [vmem:[#allocation4 + $0x510] ss:$24 sps:$4 sm:$0xff]  }
  0x90   : > { %2144 = vmatpush1.bf16.msra.mxu0 %v3173_v18  ;;  %v3222_v50 = vld [vmem:[#allocation4 + $0x514] ss:$24 sps:$4 sm:$0xff]   ;;  %v3228_v55 = vld [vmem:[#allocation4 + $0x4e4] ss:$24 sps:$4 sm:$0xff]   ;;  %v3227_v56 = vld [vmem:[#allocation4 + $0x1e0] ss:$24 sps:$4 sm:$0xff]  }
  0x91   : > { %2145 = vmatprep.subr.bf16.mxu0 %v3177_v19  ;;  %2187 = vmatpush1.bf16.msra.mxu1 %v3176_v20  ;;  %v4014_v51 = vld [vmem:[%s3994_s18 + $0xc] ss:$24 sps:$4 sm:$0xff]   ;;  %v3230_v58 = vld [vmem:[#allocation4 + $0x4e0] ss:$24 sps:$4 sm:$0xff]   ;;  %v3233_v60 = vld [vmem:[#allocation4 + $0x1b0] ss:$24 sps:$4 sm:$0xff]  }
  0x92   : > { %2188 = vmatprep.subr.bf16.mxu1 %v3180_v21  ;;  %2210 = vmatprep.mubr.bf16.mxu1 %v4014_v51  ;;  %v3231_v57 = vld [vmem:[#allocation4 + $0x1b4] ss:$24 sps:$4 sm:$0xff]   ;;  %v3237_v61 = vld [vmem:[#allocation4 + $0x184] ss:$24 sps:$4 sm:$0xff]   ;;  %v3236_v62 = vld [vmem:[#allocation4 + $0x4b0] ss:$24 sps:$4 sm:$0xff]  }
  0x93   : > { %v3234_v59 = vld [vmem:[#allocation4 + $0x4b4] ss:$24 sps:$4 sm:$0xff]   ;;  %v3240_v63 = vld [vmem:[#allocation4 + $0x484] ss:$24 sps:$4 sm:$0xff]   ;;  %v3239_v0 = vld [vmem:[#allocation4 + $0x180] ss:$24 sps:$4 sm:$0xff]  }
  0x94   : > { %2146 = vmatpush1.bf16.msra.mxu0 %v3179_v22  ;;  %v3248_v1 = vld [vmem:[#allocation4 + $0x754] ss:$24 sps:$4 sm:$0xff]   ;;  %v3244_v2 = vld [vmem:[#allocation4 + $0x480] ss:$24 sps:$4 sm:$0xff]   ;;  %v3246_v5 = vld [vmem:[#allocation4 + $0x750] ss:$24 sps:$4 sm:$0xff]  }
  0x95   : > { %2147 = vmatprep.subr.bf16.mxu0 %v3183_v23  ;;  %2189 = vmatpush1.bf16.msra.mxu1 %v3182_v24  ;;  %v4018_v3 = vld [vmem:[%s3994_s18] ss:$24 sps:$4 sm:$0xff]   ;;  %v3254_v4 = vld [vmem:[#allocation4 + $0x15c] ss:$24 sps:$4 sm:$0xff]   ;;  %v3260_v9 = vld [vmem:[#allocation4 + $0x12c] ss:$24 sps:$4 sm:$0xff]  }
  0x96   : > { %2190 = vmatprep.subr.bf16.mxu1 %v3186_v25  ;;  %v4021_v6 = vld [vmem:[%s3994_s18 + $0x8] ss:$24 sps:$4 sm:$0xff]   ;;  %v3257_v7 = vld [vmem:[#allocation4 + $0x724] ss:$24 sps:$4 sm:$0xff]   ;;  %v3263_v11 = vld [vmem:[#allocation4 + $0x6f4] ss:$24 sps:$4 sm:$0xff]  }
  0x97   : > { %v3252_v8 = vld [vmem:[#allocation4 + $0x158] ss:$24 sps:$4 sm:$0xff]   ;;  %v3258_v12 = vld [vmem:[#allocation4 + $0x128] ss:$24 sps:$4 sm:$0xff]   ;;  %v3266_v13 = vld [vmem:[#allocation4 + $0xfc] ss:$24 sps:$4 sm:$0xff]  }
  0x98   : > { %2148 = vmatpush1.bf16.msra.mxu0 %v3185_v26  ;;  %v3255_v10 = vld [vmem:[#allocation4 + $0x720] ss:$24 sps:$4 sm:$0xff]   ;;  %v3261_v14 = vld [vmem:[#allocation4 + $0x6f0] ss:$24 sps:$4 sm:$0xff]   ;;  %v3269_v15 = vld [vmem:[#allocation4 + $0x6c4] ss:$24 sps:$4 sm:$0xff]  }
  0x99   : > { %2149 = vmatprep.subr.bf16.mxu0 %v3189_v27  ;;  %2191 = vmatpush1.bf16.msra.mxu1 %v3188_v28  ;;  %v3264_v16 = vld [vmem:[#allocation4 + $0xf8] ss:$24 sps:$4 sm:$0xff]   ;;  %v3272_v17 = vld [vmem:[#allocation4 + $0xcc] ss:$24 sps:$4 sm:$0xff]   ;;  %v3270_v20 = vld [vmem:[#allocation4 + $0xc8] ss:$24 sps:$4 sm:$0xff]  }
  0x9a   : > { %2192 = vmatprep.subr.bf16.mxu1 %v3192_v29  ;;  %v3267_v18 = vld [vmem:[#allocation4 + $0x6c0] ss:$24 sps:$4 sm:$0xff]   ;;  %v3275_v19 = vld [vmem:[#allocation4 + $0x694] ss:$24 sps:$4 sm:$0xff]   ;;  %v3273_v22 = vld [vmem:[#allocation4 + $0x690] ss:$24 sps:$4 sm:$0xff]  }
  0x9b   : > { %v3278_v21 = vld [vmem:[#allocation4 + $0x9c] ss:$24 sps:$4 sm:$0xff]   ;;  %v3276_v24 = vld [vmem:[#allocation4 + $0x98] ss:$24 sps:$4 sm:$0xff]   ;;  %v3284_v25 = vld [vmem:[#allocation4 + $0x6c] ss:$24 sps:$4 sm:$0xff]  }
  0x9c   : > { %2150 = vmatpush1.bf16.msra.mxu0 %v3191_v30  ;;  %v3281_v23 = vld [vmem:[#allocation4 + $0x664] ss:$24 sps:$4 sm:$0xff]   ;;  %v3279_v26 = vld [vmem:[#allocation4 + $0x660] ss:$24 sps:$4 sm:$0xff]   ;;  %v3287_v27 = vld [vmem:[#allocation4 + $0x634] ss:$24 sps:$4 sm:$0xff]  }
  0x9d   : > { %2151 = vmatprep.subr.bf16.mxu0 %v3195_v31  ;;  %2193 = vmatpush1.bf16.msra.mxu1 %v3194_v32  ;;  %v3282_v28 = vld [vmem:[#allocation4 + $0x68] ss:$24 sps:$4 sm:$0xff]   ;;  %v3290_v29 = vld [vmem:[#allocation4 + $0x3c] ss:$24 sps:$4 sm:$0xff]   ;;  %v3288_v31 = vld [vmem:[#allocation4 + $0x38] ss:$24 sps:$4 sm:$0xff]  }
  0x9e   : > { %2194 = vmatprep.subr.bf16.mxu1 %v3198_v33  ;;  %v3285_v30 = vld [vmem:[#allocation4 + $0x630] ss:$24 sps:$4 sm:$0xff]   ;;  %v3293_v32 = vld [vmem:[#allocation4 + $0x604] ss:$24 sps:$4 sm:$0xff]   ;;  %p334_p10 = scmp.lt.s32.totalorder %s3865_s27, 1  ;;  %vm2567_vm1 = vcmask 1040384  }
  0x9f   : > { %v4026_v33 = vld [vmem:[%s3994_s18 + $0x14] ss:$24 sps:$4 sm:$0xff]  }
  0xa0   : > { %2152 = vmatpush2.bf16.msra.mxu0 %v3197_v34  ;;  %v3296_v34 = vld [vmem:[#allocation4 + $0xc] ss:$24 sps:$4 sm:$0xff]   ;;  %s4137_s27 = smov (!%p334_p10, %s3865_s27), 1 }
  0xa1   : > { %2153 = vmatprep.subr.bf16.mxu0 %v3201_v35  ;;  %2195 = vmatpush2.bf16.msra.mxu1 %v3200_v36  ;;  %v3291_v35 = vld [vmem:[#allocation4 + $0x600] ss:$24 sps:$4 sm:$0xff]   ;;  %v3299_v36 = vld [vmem:[#allocation4 + $0x8d4] ss:$24 sps:$4 sm:$0xff]   ;;  %s3052_s28 = smul.u32 144, %s4137_s27 }
  0xa2   : > { %2196 = vmatprep.subr.bf16.mxu1 %v3204_v37  ;;  %v3294_v37 = vld [vmem:[#allocation4 + $0x8] ss:$24 sps:$4 sm:$0xff]  }
  0xa3   : > { %s4042_s29 = scalar_lea.vmem %s4114_s6, %s3052_s28 }
  0xa4   : > { %2154 = vmatpush2.bf16.msra.mxu0 %v3203_v38  ;;  %v3302_v38 = vld [vmem:[#allocation4 + $0x2dc] ss:$24 sps:$4 sm:$0xff]  }
  0xa5   : > { %2155 = vmatprep.subr.bf16.mxu0 %v3207_v39  ;;  %2197 = vmatpush2.bf16.msra.mxu1 %v3206_v40  ;;  %v3297_v39 = vld [vmem:[#allocation4 + $0x8d0] ss:$24 sps:$4 sm:$0xff]   ;;  %v3305_v40 = vld [vmem:[#allocation4 + $0x8a4] ss:$24 sps:$4 sm:$0xff]  }
  0xa6   : > { %2198 = vmatprep.subr.bf16.mxu1 %v3210_v41  ;;  %v3300_v41 = vld [vmem:[#allocation4 + $0x2d8] ss:$24 sps:$4 sm:$0xff]  }
  0xa8   : > { %2156 = vmatpush2.bf16.msra.mxu0 %v3209_v42  ;;  %v3308_v42 = vld [vmem:[#allocation4 + $0x2ac] ss:$24 sps:$4 sm:$0xff]  }
  0xa9   : > { %2157 = vmatprep.subr.bf16.mxu0 %v3213_v43  ;;  %2199 = vmatpush2.bf16.msra.mxu1 %v3212_v44  ;;  %v3303_v43 = vld [vmem:[#allocation4 + $0x8a0] ss:$24 sps:$4 sm:$0xff]   ;;  %v3311_v44 = vld [vmem:[#allocation4 + $0x874] ss:$24 sps:$4 sm:$0xff]  }
  0xaa   : > { %2200 = vmatprep.subr.bf16.mxu1 %v3216_v45  ;;  %v3306_v45 = vld [vmem:[#allocation4 + $0x2a8] ss:$24 sps:$4 sm:$0xff]  }
  0xac   : > { %2158 = vmatpush2.bf16.msra.mxu0 %v3215_v46  ;;  %v3314_v46 = vld [vmem:[#allocation4 + $0x27c] ss:$24 sps:$4 sm:$0xff]  }
  0xad   : > { %2159 = vmatprep.subr.bf16.mxu0 %v3219_v48  ;;  %2201 = vmatpush2.bf16.msra.mxu1 %v3218_v49  ;;  %v3317_v48 = vld [vmem:[#allocation4 + $0x844] ss:$24 sps:$4 sm:$0xff]   ;;  %v3312_v49 = vld [vmem:[#allocation4 + $0x278] ss:$24 sps:$4 sm:$0xff]  }
  0xae   : > { %2202 = vmatprep.subr.bf16.mxu1 %v3222_v50  ;;  %v3320_v50 = vld [vmem:[#allocation4 + $0x24c] ss:$24 sps:$4 sm:$0xff]  }
  0xb0   : > { %2160 = vmatpush2.bf16.msra.mxu0 %v3221_v52  ;;  %v3315_v52 = vld [vmem:[#allocation4 + $0x840] ss:$24 sps:$4 sm:$0xff]  }
  0xb1   : > { %2161 = vmatprep.subr.bf16.mxu0 %v3225_v53  ;;  %2203 = vmatpush2.bf16.msra.mxu1 %v3224_v54  ;;  %v3323_v53 = vld [vmem:[#allocation4 + $0x814] ss:$24 sps:$4 sm:$0xff]   ;;  %v3318_v54 = vld [vmem:[#allocation4 + $0x248] ss:$24 sps:$4 sm:$0xff]  }
  0xb2   : > { %2204 = vmatprep.subr.bf16.mxu1 %v3228_v55  ;;  %v3326_v55 = vld [vmem:[#allocation4 + $0x21c] ss:$24 sps:$4 sm:$0xff]  }
  0xb4   : > { %2162 = vmatpush2.bf16.msra.mxu0 %v3227_v56  ;;  %v3321_v56 = vld [vmem:[#allocation4 + $0x810] ss:$24 sps:$4 sm:$0xff]  }
  0xb5   : > { %2163 = vmatprep.subr.bf16.mxu0 %v3231_v57  ;;  %2205 = vmatpush2.bf16.msra.mxu1 %v3230_v58  ;;  %v3329_v57 = vld [vmem:[#allocation4 + $0x7e4] ss:$24 sps:$4 sm:$0xff]   ;;  %v3324_v58 = vld [vmem:[#allocation4 + $0x218] ss:$24 sps:$4 sm:$0xff]  }
  0xb6   : > { %2206 = vmatprep.subr.bf16.mxu1 %v3234_v59  ;;  %v3332_v59 = vld [vmem:[#allocation4 + $0x1ec] ss:$24 sps:$4 sm:$0xff]  }
  0xb8   : > { %2164 = vmatpush2.bf16.msra.mxu0 %v3233_v60  ;;  %v3327_v60 = vld [vmem:[#allocation4 + $0x7e0] ss:$24 sps:$4 sm:$0xff]  }
  0xb9   : > { %2165 = vmatprep.subr.bf16.mxu0 %v3237_v61  ;;  %2207 = vmatpush2.bf16.msra.mxu1 %v3236_v62  ;;  %v3335_v61 = vld [vmem:[#allocation4 + $0x7b4] ss:$24 sps:$4 sm:$0xff]   ;;  %v3330_v62 = vld [vmem:[#allocation4 + $0x1e8] ss:$24 sps:$4 sm:$0xff]  }
  0xba   : > { %2208 = vmatprep.subr.bf16.mxu1 %v3240_v63  ;;  %v3338_v63 = vld [vmem:[#allocation4 + $0x1bc] ss:$24 sps:$4 sm:$0xff]  }
  0xbc   : > { %2166 = vmatpush2.bf16.msra.mxu0 %v3239_v0  ;;  %v3333_v0 = vld [vmem:[#allocation4 + $0x7b0] ss:$24 sps:$4 sm:$0xff]  }
  0xbd   : > { %2221 = vmatprep.subr.bf16.mxu0 %v3248_v1  ;;  %2209 = vmatpush2.bf16.msra.mxu1 %v3244_v2  ;;  %v3341_v1 = vld [vmem:[#allocation4 + $0x784] ss:$24 sps:$4 sm:$0xff]   ;;  %v3336_v2 = vld [vmem:[#allocation4 + $0x1b8] ss:$24 sps:$4 sm:$0xff]  }
  0xbe   : > { %2264 = vmatprep.subr.bf16.mxu1 %v3254_v4  ;;  %v3344_v4 = vld [vmem:[#allocation4 + $0x18c] ss:$24 sps:$4 sm:$0xff]  }
  0xbf   : > { %2168 = vmatmul.mubr.bf16.vlgmr.msra.gmra.mxu0 %v4018_v3 }
  0xc0   : > { %2222 = vmatpush1.bf16.msra.mxu0 %v3246_v5  ;;  %2211 = vmatmul.mubr.bf16.vlgmr.msra.gmra.mxu1 %v4021_v6  ;;  %v3339_v5 = vld [vmem:[#allocation4 + $0x780] ss:$24 sps:$4 sm:$0xff]  }
  0xc1   : > { %2223 = vmatprep.subr.bf16.mxu0 %v3257_v7  ;;  %2265 = vmatpush1.bf16.msra.mxu1 %v3252_v8  ;;  %v3350_v7 = vld [vmem:[#allocation4 + $0x45c] ss:$24 sps:$4 sm:$0xff]   ;;  %v3342_v8 = vld [vmem:[#allocation4 + $0x188] ss:$24 sps:$4 sm:$0xff]  }
  0xc2   : > { %2296 = vmatprep.mubr.bf16.mxu1 %v3242_v47  ;;  %2266 = vmatprep.subr.bf16.mxu1 %v3260_v9  ;;  %v3309_v47 = vld [vmem:[#allocation4 + $0x870] ss:$24 sps:$4 sm:$0xff]  }
  0xc3   : > { %2253 = vmatprep.mubr.bf16.mxu0 %v4026_v33  ;;  %v4030_v9 = vld [vmem:[%s3994_s18 + $0x10] ss:$24 sps:$4 sm:$0xff]  }
  0xc4   : > { %2224 = vmatpush1.bf16.msra.mxu0 %v3255_v10  ;;  %v3353_v10 = vld [vmem:[#allocation4 + $0x75c] ss:$24 sps:$4 sm:$0xff]  }
  0xc5   : > { %2225 = vmatprep.subr.bf16.mxu0 %v3263_v11  ;;  %2267 = vmatpush1.bf16.msra.mxu1 %v3258_v12  ;;  %v3348_v11 = vld [vmem:[#allocation4 + $0x458] ss:$24 sps:$4 sm:$0xff]   ;;  %v3356_v12 = vld [vmem:[#allocation4 + $0x42c] ss:$24 sps:$4 sm:$0xff]  }
  0xc6   : > { %2268 = vmatprep.subr.bf16.mxu1 %v3266_v13  ;;  %v3351_v13 = vld [vmem:[#allocation4 + $0x758] ss:$24 sps:$4 sm:$0xff]  }
  0xc8   : > { %2226 = vmatpush1.bf16.msra.mxu0 %v3261_v14  ;;  %v3359_v14 = vld [vmem:[#allocation4 + $0x72c] ss:$24 sps:$4 sm:$0xff]  }
  0xc9   : > { %2227 = vmatprep.subr.bf16.mxu0 %v3269_v15  ;;  %2269 = vmatpush1.bf16.msra.mxu1 %v3264_v16  ;;  %v3354_v15 = vld [vmem:[#allocation4 + $0x428] ss:$24 sps:$4 sm:$0xff]   ;;  %v3362_v16 = vld [vmem:[#allocation4 + $0x3fc] ss:$24 sps:$4 sm:$0xff]  }
  0xca   : > { %2270 = vmatprep.subr.bf16.mxu1 %v3272_v17  ;;  %v3357_v17 = vld [vmem:[#allocation4 + $0x728] ss:$24 sps:$4 sm:$0xff]  }
  0xcc   : > { %2228 = vmatpush1.bf16.msra.mxu0 %v3267_v18  ;;  %v3365_v18 = vld [vmem:[#allocation4 + $0x6fc] ss:$24 sps:$4 sm:$0xff]  }
  0xcd   : > { %2229 = vmatprep.subr.bf16.mxu0 %v3275_v19  ;;  %2271 = vmatpush1.bf16.msra.mxu1 %v3270_v20  ;;  %v3360_v19 = vld [vmem:[#allocation4 + $0x3f8] ss:$24 sps:$4 sm:$0xff]   ;;  %v3368_v20 = vld [vmem:[#allocation4 + $0x3cc] ss:$24 sps:$4 sm:$0xff]  }
  0xce   : > { %2272 = vmatprep.subr.bf16.mxu1 %v3278_v21  ;;  %v3363_v21 = vld [vmem:[#allocation4 + $0x6f8] ss:$24 sps:$4 sm:$0xff]  }
  0xd0   : > { %2230 = vmatpush1.bf16.msra.mxu0 %v3273_v22  ;;  %v3371_v22 = vld [vmem:[#allocation4 + $0x6cc] ss:$24 sps:$4 sm:$0xff]  }
  0xd1   : > { %2231 = vmatprep.subr.bf16.mxu0 %v3281_v23  ;;  %2273 = vmatpush1.bf16.msra.mxu1 %v3276_v24  ;;  %v3369_v23 = vld [vmem:[#allocation4 + $0x6c8] ss:$24 sps:$4 sm:$0xff]   ;;  %v3377_v24 = vld [vmem:[#allocation4 + $0x69c] ss:$24 sps:$4 sm:$0xff]  }
  0xd2   : > { %2274 = vmatprep.subr.bf16.mxu1 %v3284_v25  ;;  %v3372_v25 = vld [vmem:[#allocation4 + $0x398] ss:$24 sps:$4 sm:$0xff]  }
  0xd4   : > { %2232 = vmatpush1.bf16.msra.mxu0 %v3279_v26  ;;  %v3380_v26 = vld [vmem:[#allocation4 + $0x36c] ss:$24 sps:$4 sm:$0xff]  }
  0xd5   : > { %2233 = vmatprep.subr.bf16.mxu0 %v3287_v27  ;;  %2275 = vmatpush1.bf16.msra.mxu1 %v3282_v28  ;;  %v3375_v27 = vld [vmem:[#allocation4 + $0x698] ss:$24 sps:$4 sm:$0xff]   ;;  %v3383_v28 = vld [vmem:[#allocation4 + $0x66c] ss:$24 sps:$4 sm:$0xff]  }
  0xd6   : > { %2276 = vmatprep.subr.bf16.mxu1 %v3290_v29  ;;  %v3378_v29 = vld [vmem:[#allocation4 + $0x368] ss:$24 sps:$4 sm:$0xff]  }
  0xd8   : > { %2234 = vmatpush1.bf16.msra.mxu0 %v3285_v30  ;;  %v3386_v30 = vld [vmem:[#allocation4 + $0x33c] ss:$24 sps:$4 sm:$0xff]  }
  0xd9   : > { %2235 = vmatprep.subr.bf16.mxu0 %v3293_v32  ;;  %2277 = vmatpush1.bf16.msra.mxu1 %v3288_v31  ;;  %v3381_v31 = vld [vmem:[#allocation4 + $0x668] ss:$24 sps:$4 sm:$0xff]   ;;  %v3389_v32 = vld [vmem:[#allocation4 + $0x63c] ss:$24 sps:$4 sm:$0xff]  }
  0xda   : > { %2278 = vmatprep.subr.bf16.mxu1 %v3296_v34  ;;  %v3392_v34 = vld [vmem:[#allocation4 + $0x30c] ss:$24 sps:$4 sm:$0xff]  }
  0xdc   : > { %2236 = vmatpush1.bf16.msra.mxu0 %v3291_v35  ;;  %v3387_v35 = vld [vmem:[#allocation4 + $0x638] ss:$24 sps:$4 sm:$0xff]  }
  0xdd   : > { %2237 = vmatprep.subr.bf16.mxu0 %v3299_v36  ;;  %2279 = vmatpush1.bf16.msra.mxu1 %v3294_v37  ;;  %v3395_v36 = vld [vmem:[#allocation4 + $0x60c] ss:$24 sps:$4 sm:$0xff]   ;;  %v3390_v37 = vld [vmem:[#allocation4 + $0x308] ss:$24 sps:$4 sm:$0xff]  }
  0xde   : > { %2280 = vmatprep.subr.bf16.mxu1 %v3302_v38  ;;  %v3398_v38 = vld [vmem:[#allocation4 + $0x5dc] ss:$24 sps:$4 sm:$0xff]  }
  0xe0   : > { %2238 = vmatpush2.bf16.msra.mxu0 %v3297_v39  ;;  %v3393_v39 = vld [vmem:[#allocation4 + $0x608] ss:$24 sps:$4 sm:$0xff]  }
  0xe1   : > { %2239 = vmatprep.subr.bf16.mxu0 %v3305_v40  ;;  %2281 = vmatpush2.bf16.msra.mxu1 %v3300_v41  ;;  %v3401_v40 = vld [vmem:[#allocation4 + $0x8dc] ss:$24 sps:$4 sm:$0xff]   ;;  %v3396_v41 = vld [vmem:[#allocation4 + $0x5d8] ss:$24 sps:$4 sm:$0xff]  }
  0xe2   : > { %2282 = vmatprep.subr.bf16.mxu1 %v3308_v42  ;;  %v3404_v42 = vld [vmem:[#allocation4 + $0x5ac] ss:$24 sps:$4 sm:$0xff]  }
  0xe4   : > { %2240 = vmatpush2.bf16.msra.mxu0 %v3303_v43  ;;  %v3399_v43 = vld [vmem:[#allocation4 + $0x8d8] ss:$24 sps:$4 sm:$0xff]  }
  0xe5   : > { %2241 = vmatprep.subr.bf16.mxu0 %v3311_v44  ;;  %2283 = vmatpush2.bf16.msra.mxu1 %v3306_v45  ;;  %v3407_v44 = vld [vmem:[#allocation4 + $0x8ac] ss:$24 sps:$4 sm:$0xff]   ;;  %v3402_v45 = vld [vmem:[#allocation4 + $0x5a8] ss:$24 sps:$4 sm:$0xff]  }
  0xe6   : > { %2284 = vmatprep.subr.bf16.mxu1 %v3314_v46  ;;  %v3410_v46 = vld [vmem:[#allocation4 + $0x57c] ss:$24 sps:$4 sm:$0xff]  }
  0xe8   : > { %2242 = vmatpush2.bf16.msra.mxu0 %v3309_v47  ;;  %v3405_v47 = vld [vmem:[#allocation4 + $0x8a8] ss:$24 sps:$4 sm:$0xff]  }
  0xe9   : > { %2243 = vmatprep.subr.bf16.mxu0 %v3317_v48  ;;  %2285 = vmatpush2.bf16.msra.mxu1 %v3312_v49  ;;  %v3413_v48 = vld [vmem:[#allocation4 + $0x87c] ss:$24 sps:$4 sm:$0xff]   ;;  %v3408_v49 = vld [vmem:[#allocation4 + $0x578] ss:$24 sps:$4 sm:$0xff]  }
  0xea   : > { %2286 = vmatprep.subr.bf16.mxu1 %v3320_v50  ;;  %v3416_v50 = vld [vmem:[#allocation4 + $0x54c] ss:$24 sps:$4 sm:$0xff]  }
  0xec   : > { %2244 = vmatpush2.bf16.msra.mxu0 %v3315_v52  ;;  %v3411_v52 = vld [vmem:[#allocation4 + $0x878] ss:$24 sps:$4 sm:$0xff]  }
  0xed   : > { %2245 = vmatprep.subr.bf16.mxu0 %v3323_v53  ;;  %2287 = vmatpush2.bf16.msra.mxu1 %v3318_v54  ;;  %v3419_v53 = vld [vmem:[#allocation4 + $0x84c] ss:$24 sps:$4 sm:$0xff]   ;;  %v3414_v54 = vld [vmem:[#allocation4 + $0x548] ss:$24 sps:$4 sm:$0xff]  }
  0xee   : > { %2288 = vmatprep.subr.bf16.mxu1 %v3326_v55  ;;  %v3422_v55 = vld [vmem:[#allocation4 + $0x51c] ss:$24 sps:$4 sm:$0xff]  }
  0xf0   : > { %2246 = vmatpush2.bf16.msra.mxu0 %v3321_v56  ;;  %v3417_v56 = vld [vmem:[#allocation4 + $0x848] ss:$24 sps:$4 sm:$0xff]  }
  0xf1   : > { %2247 = vmatprep.subr.bf16.mxu0 %v3329_v57  ;;  %2289 = vmatpush2.bf16.msra.mxu1 %v3324_v58  ;;  %v635_v57 = vlaneseq  ;;  %v3420_v58 = vld [vmem:[#allocation4 + $0x518] ss:$24 sps:$4 sm:$0xff]  }
  0xf2   : > { %2290 = vmatprep.subr.bf16.mxu1 %v3332_v59  ;;  %v3425_v59 = vld [vmem:[#allocation4 + $0x81c] ss:$24 sps:$4 sm:$0xff]  }
  0xf3   : > { %vm2551_vm0 = vcmp.lt.s32.totalorder %v635_v57, 768 }
  0xf4   : > { %2248 = vmatpush2.bf16.msra.mxu0 %v3327_v60  ;;  %v2546_v60 = vld [vmem:[#allocation7] sm:$0x3f] }
  0xf5   : > { %2249 = vmatprep.subr.bf16.mxu0 %v3335_v61  ;;  %2291 = vmatpush2.bf16.msra.mxu1 %v3330_v62  ;;  %v2547_v61 = vld [vmem:[#allocation9] sm:$0x3f] }
  0xf6   : > { %2292 = vmatprep.subr.bf16.mxu1 %v3338_v63  ;;  %v3428_v62 = vld [vmem:[#allocation4 + $0x4ec] ss:$24 sps:$4 sm:$0xff]   ;;  %v2548_v63 = vadd.f32 %v2547_v61, %v2546_v60  ;;  %v3507_v60 = vld [vmem:[#allocation4 + $0x580] ss:$24 sps:$4 sm:$0xff]  }
  0xf7   : > { %v3515_v61 = vld [vmem:[#allocation4 + $0x554] ss:$24 sps:$4 sm:$0xff]  }
  0xf8   : > { %2250 = vmatpush2.bf16.msra.mxu0 %v3333_v0  ;;  %v3423_v0 = vld [vmem:[#allocation4 + $0x818] ss:$24 sps:$4 sm:$0xff]   ;;  %2553 = vst.msk [vmem:[%s4042_s29] ss:$8 sm:$0xf] %vm2551_vm0, %v2548_v63 }
  0xf9   : > { %2251 = vmatprep.subr.bf16.mxu0 %v3341_v1  ;;  %2293 = vmatpush2.bf16.msra.mxu1 %v3336_v2  ;;  %v3431_v1 = vld [vmem:[#allocation4 + $0x7ec] ss:$24 sps:$4 sm:$0xff]   ;;  %2554 = vst.msk [vmem:[%s4042_s29] ss:$8 sm:$0x30] %vm2551_vm0, %v2548_v63 }
  0xfa   : > { %2294 = vmatprep.subr.bf16.mxu1 %v3344_v4  ;;  %v3426_v2 = vld [vmem:[#allocation4 + $0x4e8] ss:$24 sps:$4 sm:$0xff]   ;;  %v3434_v4 = vld [vmem:[#allocation4 + $0x4bc] ss:$24 sps:$4 sm:$0xff]  }
  0xfb   : > { %v3518_v63 = vld [vmem:[#allocation4 + $0x224] ss:$24 sps:$4 sm:$0xff]  }
  0xfc   : > { %2252 = vmatpush2.bf16.msra.mxu0 %v3339_v5  ;;  %v3429_v5 = vld [vmem:[#allocation4 + $0x7e8] ss:$24 sps:$4 sm:$0xff]  }
  0xfd   : > { %2307 = vmatprep.subr.bf16.mxu0 %v3350_v7  ;;  %2295 = vmatpush2.bf16.msra.mxu1 %v3342_v8  ;;  %v3437_v7 = vld [vmem:[#allocation4 + $0x7bc] ss:$24 sps:$4 sm:$0xff]   ;;  %v3432_v8 = vld [vmem:[#allocation4 + $0x4b8] ss:$24 sps:$4 sm:$0xff]  }
  0xfe   : > { %2350 = vmatprep.subr.bf16.mxu1 %v3353_v10  ;;  %v3440_v10 = vld [vmem:[#allocation4 + $0x48c] ss:$24 sps:$4 sm:$0xff]  }
  0xff   : > { %2254 = vmatmul.mubr.bf16.vlgmr.msra.gmra.mxu0 %v4030_v9 }
 0x100   : > { %2308 = vmatpush1.bf16.msra.mxu0 %v3348_v11  ;;  %2339 = vmatprep.mubr.bf16.mxu0 %v4014_v51  ;;  %v3366_v51 = vld [vmem:[#allocation4 + $0x3c8] ss:$24 sps:$4 sm:$0xff]   ;;  %v3435_v11 = vld [vmem:[#allocation4 + $0x7b8] ss:$24 sps:$4 sm:$0xff]  }
 0x101   : > { %2297 = vmatmul.mubr.bf16.vlgmr.msra.gmra.mxu1 %v4018_v3  ;;  %2309 = vmatprep.subr.bf16.mxu0 %v3356_v12  ;;  %v3374_v3 = vld [vmem:[#allocation4 + $0x39c] ss:$24 sps:$4 sm:$0xff]   ;;  %v3443_v12 = vld [vmem:[#allocation4 + $0x78c] ss:$24 sps:$4 sm:$0xff]  }
 0x102   : > { %2351 = vmatpush1.bf16.msra.mxu1 %v3351_v13  ;;  %2382 = vmatprep.mubr.bf16.mxu1 %v4026_v33  ;;  %v3384_v33 = vld [vmem:[#allocation4 + $0x338] ss:$24 sps:$4 sm:$0xff]   ;;  %v3438_v13 = vld [vmem:[#allocation4 + $0x488] ss:$24 sps:$4 sm:$0xff]  }
 0x103   : > { %2352 = vmatprep.subr.bf16.mxu1 %v3359_v14  ;;  %v3446_v14 = vld [vmem:[#allocation4 + $0x164] ss:$24 sps:$4 sm:$0xff]  }
 0x104   : > { %2310 = vmatpush1.bf16.msra.mxu0 %v3354_v15  ;;  %v3441_v15 = vld [vmem:[#allocation4 + $0x788] ss:$24 sps:$4 sm:$0xff]  }
 0x105   : > { %2311 = vmatprep.subr.bf16.mxu0 %v3362_v16  ;;  %v3449_v16 = vld [vmem:[#allocation4 + $0x464] ss:$24 sps:$4 sm:$0xff]  }
 0x106   : > { %2353 = vmatpush1.bf16.msra.mxu1 %v3357_v17  ;;  %v3444_v17 = vld [vmem:[#allocation4 + $0x160] ss:$24 sps:$4 sm:$0xff]  }
 0x107   : > { %2354 = vmatprep.subr.bf16.mxu1 %v3365_v18  ;;  %v3452_v18 = vld [vmem:[#allocation4 + $0x134] ss:$24 sps:$4 sm:$0xff]  }
 0x108   : > { %2312 = vmatpush1.bf16.msra.mxu0 %v3360_v19  ;;  %v3447_v19 = vld [vmem:[#allocation4 + $0x460] ss:$24 sps:$4 sm:$0xff]  }
 0x109   : > { %2313 = vmatprep.subr.bf16.mxu0 %v3368_v20  ;;  %v3455_v20 = vld [vmem:[#allocation4 + $0x434] ss:$24 sps:$4 sm:$0xff]  }
 0x10a   : > { %2355 = vmatpush1.bf16.msra.mxu1 %v3363_v21  ;;  %v3450_v21 = vld [vmem:[#allocation4 + $0x130] ss:$24 sps:$4 sm:$0xff]  }
 0x10b   : > { %2356 = vmatprep.subr.bf16.mxu1 %v3371_v22  ;;  %v3588_v22 = vld [vmem:[%s3994_s18 + $0x4] ss:$24 sps:$4 sm:$0xff]  }
 0x10c   : > { %2314 = vmatpush1.bf16.msra.mxu0 %v3366_v51  ;;  %v3458_v51 = vld [vmem:[#allocation4 + $0x104] ss:$24 sps:$4 sm:$0xff]  }
 0x10d   : > { %2315 = vmatprep.subr.bf16.mxu0 %v3374_v3  ;;  %v3453_v3 = vld [vmem:[#allocation4 + $0x430] ss:$24 sps:$4 sm:$0xff]  }
 0x10e   : > { %2357 = vmatpush1.bf16.msra.mxu1 %v3369_v23  ;;  %v3589_v23 = vld [vmem:[%s3994_s18 + $0xc] ss:$24 sps:$4 sm:$0xff]  }
 0x10f   : > { %2358 = vmatprep.subr.bf16.mxu1 %v3377_v24  ;;  %v3461_v24 = vld [vmem:[#allocation4 + $0x404] ss:$24 sps:$4 sm:$0xff]  }
 0x110   : > { %2316 = vmatpush1.bf16.msra.mxu0 %v3372_v25  ;;  %v3456_v25 = vld [vmem:[#allocation4 + $0x100] ss:$24 sps:$4 sm:$0xff]  }
 0x111   : > { %2317 = vmatprep.subr.bf16.mxu0 %v3380_v26  ;;  %v3459_v26 = vld [vmem:[#allocation4 + $0x400] ss:$24 sps:$4 sm:$0xff]  }
 0x112   : > { %2359 = vmatpush1.bf16.msra.mxu1 %v3375_v27  ;;  %v3467_v27 = vld [vmem:[#allocation4 + $0x3d4] ss:$24 sps:$4 sm:$0xff]  }
 0x113   : > { %2360 = vmatprep.subr.bf16.mxu1 %v3383_v28  ;;  %v3462_v28 = vld [vmem:[#allocation4 + $0xd0] ss:$24 sps:$4 sm:$0xff]  }
 0x114   : > { %2318 = vmatpush1.bf16.msra.mxu0 %v3378_v29  ;;  %v3470_v29 = vld [vmem:[#allocation4 + $0xa4] ss:$24 sps:$4 sm:$0xff]  }
 0x115   : > { %2319 = vmatprep.subr.bf16.mxu0 %v3386_v30  ;;  %v3465_v30 = vld [vmem:[#allocation4 + $0x3d0] ss:$24 sps:$4 sm:$0xff]  }
 0x116   : > { %2361 = vmatpush1.bf16.msra.mxu1 %v3381_v31  ;;  %v3473_v31 = vld [vmem:[#allocation4 + $0x3a4] ss:$24 sps:$4 sm:$0xff]  }
 0x117   : > { %2362 = vmatprep.subr.bf16.mxu1 %v3389_v32  ;;  %v3468_v32 = vld [vmem:[#allocation4 + $0xa0] ss:$24 sps:$4 sm:$0xff]  }
 0x118   : > { %2320 = vmatpush1.bf16.msra.mxu0 %v3384_v33  ;;  %v3476_v33 = vld [vmem:[#allocation4 + $0x74] ss:$24 sps:$4 sm:$0xff]  }
 0x119   : > { %2321 = vmatprep.subr.bf16.mxu0 %v3392_v34  ;;  %v3471_v34 = vld [vmem:[#allocation4 + $0x3a0] ss:$24 sps:$4 sm:$0xff]  }
 0x11a   : > { %2363 = vmatpush1.bf16.msra.mxu1 %v3387_v35  ;;  %v3479_v35 = vld [vmem:[#allocation4 + $0x374] ss:$24 sps:$4 sm:$0xff]  }
 0x11b   : > { %2364 = vmatprep.subr.bf16.mxu1 %v3395_v36  ;;  %v3474_v36 = vld [vmem:[#allocation4 + $0x70] ss:$24 sps:$4 sm:$0xff]  }
 0x11c   : > { %2322 = vmatpush1.bf16.msra.mxu0 %v3390_v37  ;;  %v3482_v37 = vld [vmem:[#allocation4 + $0x44] ss:$24 sps:$4 sm:$0xff]  }
 0x11d   : > { %2323 = vmatprep.subr.bf16.mxu0 %v3398_v38  ;;  %v3477_v38 = vld [vmem:[#allocation4 + $0x370] ss:$24 sps:$4 sm:$0xff]  }
 0x11e   : > { %2365 = vmatpush1.bf16.msra.mxu1 %v3393_v39  ;;  %v3485_v39 = vld [vmem:[#allocation4 + $0x344] ss:$24 sps:$4 sm:$0xff]  }
 0x11f   : > { %2366 = vmatprep.subr.bf16.mxu1 %v3401_v40  ;;  %v3480_v40 = vld [vmem:[#allocation4 + $0x40] ss:$24 sps:$4 sm:$0xff]  }
 0x120   : > { %2324 = vmatpush2.bf16.msra.mxu0 %v3396_v41  ;;  %v3488_v41 = vld [vmem:[#allocation4 + $0x14] ss:$24 sps:$4 sm:$0xff]  }
 0x121   : > { %2325 = vmatprep.subr.bf16.mxu0 %v3404_v42  ;;  %v3483_v42 = vld [vmem:[#allocation4 + $0x340] ss:$24 sps:$4 sm:$0xff]  }
 0x122   : > { %2367 = vmatpush2.bf16.msra.mxu1 %v3399_v43  ;;  %v3491_v43 = vld [vmem:[#allocation4 + $0x314] ss:$24 sps:$4 sm:$0xff]  }
 0x123   : > { %2368 = vmatprep.subr.bf16.mxu1 %v3407_v44  ;;  %v3486_v44 = vld [vmem:[#allocation4 + $0x10] ss:$24 sps:$4 sm:$0xff]  }
 0x124   : > { %2326 = vmatpush2.bf16.msra.mxu0 %v3402_v45  ;;  %v3494_v45 = vld [vmem:[#allocation4 + $0x2e4] ss:$24 sps:$4 sm:$0xff]  }
 0x125   : > { %2327 = vmatprep.subr.bf16.mxu0 %v3410_v46  ;;  %v3489_v46 = vld [vmem:[#allocation4 + $0x310] ss:$24 sps:$4 sm:$0xff]  }
 0x126   : > { %2369 = vmatpush2.bf16.msra.mxu1 %v3405_v47  ;;  %v3497_v47 = vld [vmem:[#allocation4 + $0x5e4] ss:$24 sps:$4 sm:$0xff]  }
 0x127   : > { %2370 = vmatprep.subr.bf16.mxu1 %v3413_v48  ;;  %v3492_v48 = vld [vmem:[#allocation4 + $0x2e0] ss:$24 sps:$4 sm:$0xff]  }
 0x128   : > { %2328 = vmatpush2.bf16.msra.mxu0 %v3408_v49  ;;  %v3500_v49 = vld [vmem:[#allocation4 + $0x2b4] ss:$24 sps:$4 sm:$0xff]  }
 0x129   : > { %2329 = vmatprep.subr.bf16.mxu0 %v3416_v50  ;;  %v3495_v50 = vld [vmem:[#allocation4 + $0x5e0] ss:$24 sps:$4 sm:$0xff]  }
 0x12a   : > { %2371 = vmatpush2.bf16.msra.mxu1 %v3411_v52  ;;  %v3503_v52 = vld [vmem:[#allocation4 + $0x5b4] ss:$24 sps:$4 sm:$0xff]  }
 0x12b   : > { %2372 = vmatprep.subr.bf16.mxu1 %v3419_v53  ;;  %v3498_v53 = vld [vmem:[#allocation4 + $0x2b0] ss:$24 sps:$4 sm:$0xff]  }
 0x12c   : > { %2330 = vmatpush2.bf16.msra.mxu0 %v3414_v54  ;;  %v3506_v54 = vld [vmem:[#allocation4 + $0x284] ss:$24 sps:$4 sm:$0xff]  }
 0x12d   : > { %2331 = vmatprep.subr.bf16.mxu0 %v3422_v55  ;;  %v3501_v55 = vld [vmem:[#allocation4 + $0x5b0] ss:$24 sps:$4 sm:$0xff]  }
 0x12e   : > { %2373 = vmatpush2.bf16.msra.mxu1 %v3417_v56  ;;  %v3509_v56 = vld [vmem:[#allocation4 + $0x584] ss:$24 sps:$4 sm:$0xff]  }
 0x12f   : > { %2374 = vmatprep.subr.bf16.mxu1 %v3425_v59  ;;  %v3512_v59 = vld [vmem:[#allocation4 + $0x254] ss:$24 sps:$4 sm:$0xff]  }
 0x130   : > { %2332 = vmatpush2.bf16.msra.mxu0 %v3420_v58  ;;  %v3504_v58 = vld [vmem:[#allocation4 + $0x280] ss:$24 sps:$4 sm:$0xff]  }
 0x131   : > { %2333 = vmatprep.subr.bf16.mxu0 %v3428_v62  ;;  %v3510_v62 = vld [vmem:[#allocation4 + $0x250] ss:$24 sps:$4 sm:$0xff]  }
 0x132   : > { %2375 = vmatpush2.bf16.msra.mxu1 %v3423_v0  ;;  %v3513_v0 = vld [vmem:[#allocation4 + $0x550] ss:$24 sps:$4 sm:$0xff]  }
 0x133   : > { %2376 = vmatprep.subr.bf16.mxu1 %v3431_v1  ;;  %v3521_v1 = vld [vmem:[#allocation4 + $0x524] ss:$24 sps:$4 sm:$0xff]  }
 0x134   : > { %2334 = vmatpush2.bf16.msra.mxu0 %v3426_v2  ;;  %v3516_v2 = vld [vmem:[#allocation4 + $0x220] ss:$24 sps:$4 sm:$0xff]  }
 0x135   : > { %2335 = vmatprep.subr.bf16.mxu0 %v3434_v4  ;;  %v3524_v4 = vld [vmem:[#allocation4 + $0x1f4] ss:$24 sps:$4 sm:$0xff]  }
 0x136   : > { %2377 = vmatpush2.bf16.msra.mxu1 %v3429_v5  ;;  %v3519_v5 = vld [vmem:[#allocation4 + $0x520] ss:$24 sps:$4 sm:$0xff]  }
 0x137   : > { %2378 = vmatprep.subr.bf16.mxu1 %v3437_v7  ;;  %v3527_v7 = vld [vmem:[#allocation4 + $0x4f4] ss:$24 sps:$4 sm:$0xff]  }
 0x138   : > { %2336 = vmatpush2.bf16.msra.mxu0 %v3432_v8  ;;  %v3522_v8 = vld [vmem:[#allocation4 + $0x1f0] ss:$24 sps:$4 sm:$0xff]  }
 0x139   : > { %2337 = vmatprep.subr.bf16.mxu0 %v3440_v10  ;;  %v3530_v10 = vld [vmem:[#allocation4 + $0x1c4] ss:$24 sps:$4 sm:$0xff]  }
 0x13a   : > { %2379 = vmatpush2.bf16.msra.mxu1 %v3435_v11  ;;  %v3525_v11 = vld [vmem:[#allocation4 + $0x4f0] ss:$24 sps:$4 sm:$0xff]  }
 0x13b   : > { %2380 = vmatprep.subr.bf16.mxu1 %v3443_v12  ;;  %v3533_v12 = vld [vmem:[#allocation4 + $0x4c4] ss:$24 sps:$4 sm:$0xff]  }
 0x13c   : > { %2338 = vmatpush2.bf16.msra.mxu0 %v3438_v13  ;;  %v3528_v13 = vld [vmem:[#allocation4 + $0x1c0] ss:$24 sps:$4 sm:$0xff]  }
 0x13d   : > { %2393 = vmatprep.subr.bf16.mxu0 %v3446_v14  ;;  %v3536_v14 = vld [vmem:[#allocation4 + $0x194] ss:$24 sps:$4 sm:$0xff]  }
 0x13e   : > { %2381 = vmatpush2.bf16.msra.mxu1 %v3441_v15  ;;  %v3531_v15 = vld [vmem:[#allocation4 + $0x4c0] ss:$24 sps:$4 sm:$0xff]  }
 0x13f   : > { %2340 = vmatmul.mubr.bf16.vlgmr.msra.gmra.mxu0 %v4021_v6  ;;  %2436 = vmatprep.subr.bf16.mxu1 %v3449_v16  ;;  %v3464_v6 = vld [vmem:[#allocation4 + $0xd4] ss:$24 sps:$4 sm:$0xff]  }
 0x140   : > { %2394 = vmatpush1.bf16.msra.mxu0 %v3444_v17  ;;  %2425 = vmatprep.mubr.bf16.mxu0 %v3588_v22  ;;  %v3539_v16 = vld [vmem:[#allocation4 + $0x494] ss:$24 sps:$4 sm:$0xff]   ;;  %v3534_v17 = vld [vmem:[#allocation4 + $0x190] ss:$24 sps:$4 sm:$0xff]  }
 0x141   : > { %2383 = vmatmul.mubr.bf16.vlgmr.msra.gmra.mxu1 %v4030_v9  ;;  %2395 = vmatprep.subr.bf16.mxu0 %v3452_v18  ;;  %v3542_v18 = vld [vmem:[#allocation4 + $0x764] ss:$24 sps:$4 sm:$0xff]   ;;  %v3590_v22 = vld [vmem:[%s3994_s18] ss:$24 sps:$4 sm:$0xff]  }
 0x142   : > { %2437 = vmatpush1.bf16.msra.mxu1 %v3447_v19  ;;  %2468 = vmatprep.mubr.bf16.mxu1 %v3589_v23  ;;  %v3537_v19 = vld [vmem:[#allocation4 + $0x490] ss:$24 sps:$4 sm:$0xff]  }
 0x143   : > { %2438 = vmatprep.subr.bf16.mxu1 %v3455_v20  ;;  %v3540_v20 = vld [vmem:[#allocation4 + $0x760] ss:$24 sps:$4 sm:$0xff]  }
 0x144   : > { %2396 = vmatpush1.bf16.msra.mxu0 %v3450_v21  ;;  %v3545_v21 = vld [vmem:[#allocation4 + $0x734] ss:$24 sps:$4 sm:$0xff]   ;;  %v3592_v23 = vld [vmem:[%s3994_s18 + $0x8] ss:$24 sps:$4 sm:$0xff]  }
 0x145   : > { %2397 = vmatprep.subr.bf16.mxu0 %v3458_v51  ;;  %v3543_v51 = vld [vmem:[#allocation4 + $0x730] ss:$24 sps:$4 sm:$0xff]  }
 0x146   : > { %2439 = vmatpush1.bf16.msra.mxu1 %v3453_v3  ;;  %v3591_v3 = vld [vmem:[%s3994_s18 + $0x14] ss:$24 sps:$4 sm:$0xff]  }
 0x147   : > { %2440 = vmatprep.subr.bf16.mxu1 %v3461_v24  ;;  %v3548_v24 = vld [vmem:[#allocation4 + $0x704] ss:$24 sps:$4 sm:$0xff]  }
 0x148   : > { %2398 = vmatpush1.bf16.msra.mxu0 %v3456_v25  ;;  %v3546_v25 = vld [vmem:[#allocation4 + $0x700] ss:$24 sps:$4 sm:$0xff]  }
 0x149   : > { %2399 = vmatprep.subr.bf16.mxu0 %v3464_v6  ;;  %v3551_v6 = vld [vmem:[#allocation4 + $0x6d4] ss:$24 sps:$4 sm:$0xff]  }
 0x14a   : > { %2441 = vmatpush1.bf16.msra.mxu1 %v3459_v26  ;;  %v3549_v26 = vld [vmem:[#allocation4 + $0x6d0] ss:$24 sps:$4 sm:$0xff]  }
 0x14b   : > { %2442 = vmatprep.subr.bf16.mxu1 %v3467_v27  ;;  %v3554_v27 = vld [vmem:[#allocation4 + $0x6a4] ss:$24 sps:$4 sm:$0xff]  }
 0x14c   : > { %2400 = vmatpush1.bf16.msra.mxu0 %v3462_v28  ;;  %v3552_v28 = vld [vmem:[#allocation4 + $0x6a0] ss:$24 sps:$4 sm:$0xff]  }
 0x14d   : > { %2401 = vmatprep.subr.bf16.mxu0 %v3470_v29  ;;  %v3557_v29 = vld [vmem:[#allocation4 + $0x674] ss:$24 sps:$4 sm:$0xff]  }
 0x14e   : > { %2443 = vmatpush1.bf16.msra.mxu1 %v3465_v30  ;;  %v3555_v30 = vld [vmem:[#allocation4 + $0x670] ss:$24 sps:$4 sm:$0xff]  }
 0x14f   : > { %2444 = vmatprep.subr.bf16.mxu1 %v3473_v31  ;;  %v3560_v31 = vld [vmem:[#allocation4 + $0x644] ss:$24 sps:$4 sm:$0xff]  }
 0x150   : > { %2402 = vmatpush1.bf16.msra.mxu0 %v3468_v32  ;;  %v3558_v32 = vld [vmem:[#allocation4 + $0x640] ss:$24 sps:$4 sm:$0xff]  }
 0x151   : > { %2403 = vmatprep.subr.bf16.mxu0 %v3476_v33  ;;  %v3563_v33 = vld [vmem:[#allocation4 + $0x614] ss:$24 sps:$4 sm:$0xff]  }
 0x152   : > { %2445 = vmatpush1.bf16.msra.mxu1 %v3471_v34  ;;  %v3561_v34 = vld [vmem:[#allocation4 + $0x610] ss:$24 sps:$4 sm:$0xff]  }
 0x153   : > { %2446 = vmatprep.subr.bf16.mxu1 %v3479_v35  ;;  %v3566_v35 = vld [vmem:[#allocation4 + $0x8e4] ss:$24 sps:$4 sm:$0xff]  }
 0x154   : > { %2404 = vmatpush1.bf16.msra.mxu0 %v3474_v36  ;;  %v3564_v36 = vld [vmem:[#allocation4 + $0x8e0] ss:$24 sps:$4 sm:$0xff]  }
 0x155   : > { %2405 = vmatprep.subr.bf16.mxu0 %v3482_v37  ;;  %v3569_v37 = vld [vmem:[#allocation4 + $0x8b4] ss:$24 sps:$4 sm:$0xff]  }
 0x156   : > { %2447 = vmatpush1.bf16.msra.mxu1 %v3477_v38  ;;  %v3567_v38 = vld [vmem:[#allocation4 + $0x8b0] ss:$24 sps:$4 sm:$0xff]  }
 0x157   : > { %2448 = vmatprep.subr.bf16.mxu1 %v3485_v39  ;;  %v3572_v39 = vld [vmem:[#allocation4 + $0x884] ss:$24 sps:$4 sm:$0xff]  }
 0x158   : > { %2406 = vmatpush1.bf16.msra.mxu0 %v3480_v40  ;;  %v3570_v40 = vld [vmem:[#allocation4 + $0x880] ss:$24 sps:$4 sm:$0xff]  }
 0x159   : > { %2407 = vmatprep.subr.bf16.mxu0 %v3488_v41  ;;  %v3575_v41 = vld [vmem:[#allocation4 + $0x854] ss:$24 sps:$4 sm:$0xff]  }
 0x15a   : > { %2449 = vmatpush1.bf16.msra.mxu1 %v3483_v42  ;;  %v3573_v42 = vld [vmem:[#allocation4 + $0x850] ss:$24 sps:$4 sm:$0xff]  }
 0x15b   : > { %2450 = vmatprep.subr.bf16.mxu1 %v3491_v43  ;;  %v3578_v43 = vld [vmem:[#allocation4 + $0x824] ss:$24 sps:$4 sm:$0xff]  }
 0x15c   : > { %2408 = vmatpush1.bf16.msra.mxu0 %v3486_v44  ;;  %v3576_v44 = vld [vmem:[#allocation4 + $0x820] ss:$24 sps:$4 sm:$0xff]  }
 0x15d   : > { %2409 = vmatprep.subr.bf16.mxu0 %v3494_v45  ;;  %v3581_v45 = vld [vmem:[#allocation4 + $0x7f4] ss:$24 sps:$4 sm:$0xff]  }
 0x15e   : > { %2451 = vmatpush1.bf16.msra.mxu1 %v3489_v46  ;;  %v4054_v46 = vshrl.u32 %v635_v57, 7 }
 0x15f   : > { %2452 = vmatprep.subr.bf16.mxu1 %v3497_v47  ;;  %v3579_v47 = vld [vmem:[#allocation4 + $0x7f0] ss:$24 sps:$4 sm:$0xff]  }
 0x160   : > { %2410 = vmatpush2.bf16.msra.mxu0 %v3492_v48 }
 0x161   : > { %2411 = vmatprep.subr.bf16.mxu0 %v3500_v49  ;;  %v3584_v49 = vld [vmem:[#allocation4 + $0x7c4] ss:$24 sps:$4 sm:$0xff]  }
 0x162   : > { %2453 = vmatpush2.bf16.msra.mxu1 %v3495_v50  ;;  %v637_v50 = vsub.s32 0, %v4054_v46 }
 0x163   : > { %2454 = vmatprep.subr.bf16.mxu1 %v3503_v52  ;;  %v4057_v52 = vld [vmem:[#allocation6] sm:$0x3f] }
 0x164   : > { %2412 = vmatpush2.bf16.msra.mxu0 %v3498_v53  ;;  %v641_v53 = vsub.s32 1, %v4054_v46  ;;  %v638_v57 = vrot.slane %v4057_v52, %v637_v50 }
 0x165   : > { %2413 = vmatprep.subr.bf16.mxu0 %v3506_v54  ;;  %v3582_v54 = vld [vmem:[#allocation4 + $0x7c0] ss:$24 sps:$4 sm:$0xff]  }
 0x166   : > { %2455 = vmatpush2.bf16.msra.mxu1 %v3501_v55 }
 0x167   : > { %2456 = vmatprep.subr.bf16.mxu1 %v3509_v56 }
 0x168   : > { %2414 = vmatpush2.bf16.msra.mxu0 %v3504_v58  ;;  %v3587_v58 = vld [vmem:[#allocation4 + $0x794] ss:$24 sps:$4 sm:$0xff]  }
 0x169   : > { %2415 = vmatprep.subr.bf16.mxu0 %v3512_v59  ;;  %v642_v59 = vrot.slane %v4057_v52, %v641_v53 }
 0x16a   : > { %2457 = vmatpush2.bf16.msra.mxu1 %v3507_v60  ;;  %v3585_v60 = vld [vmem:[#allocation4 + $0x790] ss:$24 sps:$4 sm:$0xff]  }
 0x16b   : > { %2458 = vmatprep.subr.bf16.mxu1 %v3515_v61 }
 0x16c   : > { %2416 = vmatpush2.bf16.msra.mxu0 %v3510_v62 }
 0x16d   : > { %2417 = vmatprep.subr.bf16.mxu0 %v3518_v63 }
 0x16e   : > { %2459 = vmatpush2.bf16.msra.mxu1 %v3513_v0 }
 0x16f   : > { %2460 = vmatprep.subr.bf16.mxu1 %v3521_v1 }
 0x170   : > { %2418 = vmatpush2.bf16.msra.mxu0 %v3516_v2 }
 0x171   : > { %2419 = vmatprep.subr.bf16.mxu0 %v3524_v4 }
 0x172   : > { %2461 = vmatpush2.bf16.msra.mxu1 %v3519_v5 }
 0x173   : > { %2462 = vmatprep.subr.bf16.mxu1 %v3527_v7 }
 0x174   : > { %2420 = vmatpush2.bf16.msra.mxu0 %v3522_v8  ;;  %v2522_v8 = vld [vmem:[#allocation10] sm:$0xff] }
 0x175   : > { %2421 = vmatprep.subr.bf16.mxu0 %v3530_v10 }
 0x176   : > { %2463 = vmatpush2.bf16.msra.mxu1 %v3525_v11 }
 0x177   : > { %2464 = vmatprep.subr.bf16.mxu1 %v3533_v12 }
 0x178   : > { %2422 = vmatpush2.bf16.msra.mxu0 %v3528_v13 }
 0x179   : > { %2423 = vmatprep.subr.bf16.mxu0 %v3536_v14 }
 0x17a   : > { %2465 = vmatpush2.bf16.msra.mxu1 %v3531_v15  ;;  %v2523_v15 = vld [vmem:[#allocation10 + $0x8] sm:$0xff] }
 0x17b   : > { %2466 = vmatprep.subr.bf16.mxu1 %v3539_v16 }
 0x17c   : > { %2424 = vmatpush2.bf16.msra.mxu0 %v3534_v17 }
 0x17d   : > { %2479 = vmatprep.subr.bf16.mxu0 %v3542_v18 }
 0x17e   : > { %2467 = vmatpush2.bf16.msra.mxu1 %v3537_v19 }
 0x17f   : > { %2426 = vmatmul.mubr.bf16.vlgmr.msra.gmra.mxu0 %v3590_v22  ;;  %v2169_v48 = vpop.f32.mrf.mxu0 }
 0x180   : > { %2480 = vmatpush1.bf16.msra.mxu0 %v3540_v20  ;;  %2511 = vmatprep.mubr.bf16.mxu0 %v3591_v3  ;;  %v2212_v56 = vpop.f32.mrf.mxu1  ;;  %v2170_v63 = vadd.f32 %v2169_v48, %v638_v57  ;;  %v2528_v20 = vld [vmem:[#allocation10 + $0x30] sm:$0xff] }
 0x181   : > { %2469 = vmatmul.mubr.bf16.vlgmr.msra.gmra.mxu1 %v3592_v23  ;;  %2481 = vmatprep.subr.bf16.mxu0 %v3545_v21  ;;  %v2171_v55 = vpop.f32.mrf.mxu0  ;;  %v2529_v23 = vld [vmem:[#allocation10 + $0x38] sm:$0xff] }
 0x182   : > { %v2214_v62 = vpop.f32.mrf.mxu1  ;;  %v2172_v0 = vadd.f32 %v2171_v55, %v642_v59  ;;  %v2213_v4 = vadd.f32 %v2212_v56, %v2170_v63 }
 0x183   : > { %v2173_v61 = vpop.f32.mrf.mxu0 }
 0x184   : > { %2482 = vmatpush1.bf16.msra.mxu0 %v3543_v51  ;;  %v2216_v2 = vpop.f32.mrf.mxu1  ;;  %v2174_v5 = vadd.f32 %v2173_v61, %v638_v57  ;;  %v2215_v10 = vadd.f32 %v2214_v62, %v2172_v0  ;;  %v2530_v61 = vld [vmem:[#allocation10 + $0x40] sm:$0xff] }
 0x185   : > { %2483 = vmatprep.subr.bf16.mxu0 %v3548_v24  ;;  %v2175_v1 = vpop.f32.mrf.mxu0 }
 0x186   : > { %v2176_v11 = vadd.f32 %v2175_v1, %v642_v59  ;;  %v2218_v13 = vpop.f32.mrf.mxu1  ;;  %v2217_v16 = vadd.f32 %v2216_v2, %v2174_v5 }
 0x188   : > { %2484 = vmatpush1.bf16.msra.mxu0 %v3546_v25  ;;  %v2219_v21 = vadd.f32 %v2218_v13, %v2176_v11 }
 0x189   : > { %2485 = vmatprep.subr.bf16.mxu0 %v3551_v6 }
 0x18c   : > { %2486 = vmatpush1.bf16.msra.mxu0 %v3549_v26 }
 0x18d   : > { %2487 = vmatprep.subr.bf16.mxu0 %v3554_v27 }
 0x190   : > { %2488 = vmatpush1.bf16.msra.mxu0 %v3552_v28 }
 0x191   : > { %2489 = vmatprep.subr.bf16.mxu0 %v3557_v29 }
 0x194   : > { %2490 = vmatpush1.bf16.msra.mxu0 %v3555_v30 }
 0x195   : > { %2491 = vmatprep.subr.bf16.mxu0 %v3560_v31 }
 0x198   : > { %2492 = vmatpush1.bf16.msra.mxu0 %v3558_v32  ;;  %v645_v32 = vsub.s32 2, %v4054_v46 }
 0x199   : > { %2493 = vmatprep.subr.bf16.mxu0 %v3563_v33 }
 0x19c   : > { %2494 = vmatpush1.bf16.msra.mxu0 %v3561_v34  ;;  %v649_v34 = vsub.s32 3, %v4054_v46 }
 0x19d   : > { %2495 = vmatprep.subr.bf16.mxu0 %v3566_v35  ;;  %v646_v35 = vrot.slane %v4057_v52, %v645_v32  ;;  %v2527_v32 = vld [vmem:[#allocation10 + $0x28] sm:$0xff] }
 0x1a0   : > { %2496 = vmatpush2.bf16.msra.mxu0 %v3564_v36 }
 0x1a1   : > { %2497 = vmatprep.subr.bf16.mxu0 %v3569_v37  ;;  %v650_v37 = vrot.slane %v4057_v52, %v649_v34 }
 0x1a4   : > { %2498 = vmatpush2.bf16.msra.mxu0 %v3567_v38 }
 0x1a5   : > { %2499 = vmatprep.subr.bf16.mxu0 %v3572_v39 }
 0x1a8   : > { %2500 = vmatpush2.bf16.msra.mxu0 %v3570_v40 }
 0x1a9   : > { %2501 = vmatprep.subr.bf16.mxu0 %v3575_v41 }
 0x1ac   : > { %2502 = vmatpush2.bf16.msra.mxu0 %v3573_v42 }
 0x1ad   : > { %2503 = vmatprep.subr.bf16.mxu0 %v3578_v43 }
 0x1b0   : > { %2504 = vmatpush2.bf16.msra.mxu0 %v3576_v44 }
 0x1b1   : > { %2505 = vmatprep.subr.bf16.mxu0 %v3581_v45  ;;  %v2524_v45 = vld [vmem:[#allocation10 + $0x10] sm:$0xff] }
 0x1b4   : > { %2506 = vmatpush2.bf16.msra.mxu0 %v3579_v47 }
 0x1b5   : > { %2507 = vmatprep.subr.bf16.mxu0 %v3584_v49 }
 0x1b8   : > { %2508 = vmatpush2.bf16.msra.mxu0 %v3582_v54  ;;  %v2525_v54 = vld [vmem:[#allocation10 + $0x18] sm:$0xff] }
 0x1b9   : > { %2509 = vmatprep.subr.bf16.mxu0 %v3587_v58 }
 0x1bc   : > { %2510 = vmatpush2.bf16.msra.mxu0 %v3585_v60 }
 0x1bf   : > { %v2255_v7 = vpop.f32.mrf.mxu0  ;;  %2512 = vmatmul.mubr.bf16.vlgmr.msra.gmra.mxu0 %v4030_v9 }
 0x1c0   : > { %v2256_v12 = vadd.f32 %v2255_v7, %v2213_v4  ;;  %v2531_v4 = vld [vmem:[#allocation10 + $0x48] sm:$0xff] }
 0x1c1   : > { %v2257_v14 = vpop.f32.mrf.mxu0  ;;  %v2298_v31 = vpop.f32.mrf.mxu1 }
 0x1c2   : > { %v2534_v17 = vadd.f32 %v2522_v8, %v2256_v12  ;;  %v2258_v18 = vadd.f32 %v2257_v14, %v2215_v10  ;;  %v2299_v38 = vadd.f32 %v2298_v31, %v646_v35 }
 0x1c3   : > { %v2259_v19 = vpop.f32.mrf.mxu0  ;;  %v2300_v33 = vpop.f32.mrf.mxu1 }
 0x1c4   : > { %v2568_v22 = vrot.slane %v2534_v17, 7  ;;  %v2535_v51 = vadd.f32 %v2523_v15, %v2258_v18  ;;  %v2260_v3 = vadd.f32 %v2259_v19, %v2217_v16  ;;  %v2301_v40 = vadd.f32 %v2300_v33, %v650_v37 }
 0x1c5   : > { %v2261_v9 = vpop.f32.mrf.mxu0  ;;  %v2302_v36 = vpop.f32.mrf.mxu1  ;;  %v653_v16 = vsub.s32 4, %v4054_v46  ;;  %v657_v17 = vsub.s32 5, %v4054_v46 }
 0x1c6   : > { %2604 = vst [vmem:[%s4042_s29] sm:$0xfe] %v2568_v22  ;;  %v2569_v24 = vrot.slane %v2535_v51, 7  ;;  %v2540_v25 = vadd.f32 %v2528_v20, %v2260_v3  ;;  %v2262_v6 = vadd.f32 %v2261_v9, %v2219_v21  ;;  %v2303_v47 = vadd.f32 %v2302_v36, %v646_v35  ;;  %v2532_v36 = vld [vmem:[#allocation10 + $0x50] sm:$0xff] }
 0x1c7   : > { %v2304_v39 = vpop.f32.mrf.mxu1  ;;  %v654_v20 = vrot.slane %v4057_v52, %v653_v16  ;;  %v658_v21 = vrot.slane %v4057_v52, %v657_v17 }
 0x1c8   : > { %2605 = vst [vmem:[%s4042_s29 + $0x8] sm:$0xfe] %v2569_v24  ;;  %v2574_v26 = vrot.slane %v2540_v25, 7  ;;  %v2541_v27 = vadd.f32 %v2529_v23, %v2262_v6  ;;  %v2305_v55 = vadd.f32 %v2304_v39, %v650_v37 }
 0x1ca   : > { %v2575_v28 = vsel %vm2567_vm1, %v2568_v22, %v2574_v26  ;;  %2616 = vst [vmem:[%s4042_s29 + $0x60] sm:$0x1] %v2574_v26  ;;  %v2576_v29 = vrot.slane %v2541_v27, 7  ;;  %v2526_v27 = vld [vmem:[#allocation10 + $0x20] sm:$0xff] }
 0x1cb   : > { %2610 = vst [vmem:[%s4042_s29 + $0x30] sm:$0xff] %v2575_v28 }
 0x1cc   : > { %v2577_v30 = vsel %vm2567_vm1, %v2569_v24, %v2576_v29  ;;  %2617 = vst [vmem:[%s4042_s29 + $0x68] sm:$0x1] %v2576_v29 }
 0x1cd   : > { %2611 = vst [vmem:[%s4042_s29 + $0x38] sm:$0xff] %v2577_v30 }
 0x1ff   : > { %v2341_v41 = vpop.f32.mrf.mxu0 }
 0x200   : > { %v2342_v42 = vadd.f32 %v2341_v41, %v2299_v38 }
 0x201   : > { %v2343_v43 = vpop.f32.mrf.mxu0  ;;  %v2384_v44 = vpop.f32.mrf.mxu1 }
 0x202   : > { %v2344_v48 = vadd.f32 %v2343_v43, %v2301_v40  ;;  %v2385_v49 = vadd.f32 %v2384_v44, %v2342_v42  ;;  %v2533_v42 = vld [vmem:[#allocation10 + $0x58] sm:$0xff] }
 0x203   : > { %v2345_v50 = vpop.f32.mrf.mxu0  ;;  %v2386_v53 = vpop.f32.mrf.mxu1 }
 0x204   : > { %v2536_v56 = vadd.f32 %v2524_v45, %v2385_v49  ;;  %v2346_v58 = vadd.f32 %v2345_v50, %v2303_v47  ;;  %v2387_v57 = vadd.f32 %v2386_v53, %v2344_v48 }
 0x205   : > { %v2347_v59 = vpop.f32.mrf.mxu0  ;;  %v2388_v60 = vpop.f32.mrf.mxu1 }
 0x206   : > { %v2570_v62 = vrot.slane %v2536_v56, 7  ;;  %v2537_v63 = vadd.f32 %v2525_v54, %v2387_v57  ;;  %v2348_v0 = vadd.f32 %v2347_v59, %v2305_v55  ;;  %v2389_v1 = vadd.f32 %v2388_v60, %v2346_v58 }
 0x207   : > { %v2390_v2 = vpop.f32.mrf.mxu1 }
 0x208   : > { %2606 = vst [vmem:[%s4042_s29 + $0x10] sm:$0xfe] %v2570_v62  ;;  %v2571_v5 = vrot.slane %v2537_v63, 7  ;;  %v2542_v7 = vadd.f32 %v2530_v61, %v2389_v1  ;;  %v2391_v8 = vadd.f32 %v2390_v2, %v2348_v0 }
 0x20a   : > { %2607 = vst [vmem:[%s4042_s29 + $0x18] sm:$0xfe] %v2571_v5  ;;  %v2578_v10 = vrot.slane %v2542_v7, 7  ;;  %v2543_v11 = vadd.f32 %v2531_v4, %v2391_v8 }
 0x20c   : > { %v2579_v12 = vsel %vm2567_vm1, %v2570_v62, %v2578_v10  ;;  %2618 = vst [vmem:[%s4042_s29 + $0x70] sm:$0x1] %v2578_v10  ;;  %v2580_v13 = vrot.slane %v2543_v11, 7 }
 0x20d   : > { %2612 = vst [vmem:[%s4042_s29 + $0x40] sm:$0xff] %v2579_v12 }
 0x20e   : > { %v2581_v14 = vsel %vm2567_vm1, %v2571_v5, %v2580_v13  ;;  %2619 = vst [vmem:[%s4042_s29 + $0x78] sm:$0x1] %v2580_v13 }
 0x20f   : > { %2613 = vst [vmem:[%s4042_s29 + $0x48] sm:$0xff] %v2581_v14 }
 0x23f   : > { %v2427_v15 = vpop.f32.mrf.mxu0 }
 0x240   : > { %v2428_v3 = vadd.f32 %v2427_v15, %v654_v20 }
 0x241   : > { %v2429_v18 = vpop.f32.mrf.mxu0  ;;  %v2470_v19 = vpop.f32.mrf.mxu1 }
 0x242   : > { %v2430_v9 = vadd.f32 %v2429_v18, %v658_v21  ;;  %v2471_v25 = vadd.f32 %v2470_v19, %v2428_v3 }
 0x243   : > { %v2431_v22 = vpop.f32.mrf.mxu0  ;;  %v2472_v51 = vpop.f32.mrf.mxu1 }
 0x244   : > { %v2432_v6 = vadd.f32 %v2431_v22, %v654_v20  ;;  %v2473_v28 = vadd.f32 %v2472_v51, %v2430_v9 }
 0x245   : > { %v2433_v23 = vpop.f32.mrf.mxu0  ;;  %v2474_v24 = vpop.f32.mrf.mxu1 }
 0x246   : > { %v2434_v29 = vadd.f32 %v2433_v23, %v658_v21  ;;  %v2475_v33 = vadd.f32 %v2474_v24, %v2432_v6 }
 0x247   : > { %v2476_v30 = vpop.f32.mrf.mxu1 }
 0x248   : > { %v2477_v37 = vadd.f32 %v2476_v30, %v2434_v29 }
 0x27f   : > { %v2513_v26 = vpop.f32.mrf.mxu0 }
 0x280   : > { %v2514_v46 = vadd.f32 %v2513_v26, %v2471_v25 }
 0x281   : > { %v2515_v31 = vpop.f32.mrf.mxu0 }
 0x282   : > { %v2538_v52 = vadd.f32 %v2526_v27, %v2514_v46  ;;  %v2516_v34 = vadd.f32 %v2515_v31, %v2473_v28 }
 0x283   : > { %v2517_v35 = vpop.f32.mrf.mxu0 }
 0x284   : > { %v2572_v38 = vrot.slane %v2538_v52, 7  ;;  %v2539_v39 = vadd.f32 %v2527_v32, %v2516_v34  ;;  %v2518_v40 = vadd.f32 %v2517_v35, %v2475_v33 }
 0x285   : > { %v2519_v41 = vpop.f32.mrf.mxu0 }
 0x286   : > { %2608 = vst [vmem:[%s4042_s29 + $0x20] sm:$0xfe] %v2572_v38  ;;  %v2573_v43 = vrot.slane %v2539_v39, 7  ;;  %v2544_v44 = vadd.f32 %v2532_v36, %v2518_v40  ;;  %v2520_v45 = vadd.f32 %v2519_v41, %v2477_v37 }
 0x288   : > { %2609 = vst [vmem:[%s4042_s29 + $0x28] sm:$0xfe] %v2573_v43  ;;  %v2582_v47 = vrot.slane %v2544_v44, 7  ;;  %v2545_v48 = vadd.f32 %v2533_v42, %v2520_v45 }
 0x28a   : > { %v2583_v49 = vsel %vm2567_vm1, %v2572_v38, %v2582_v47  ;;  %2620 = vst [vmem:[%s4042_s29 + $0x80] sm:$0x1] %v2582_v47  ;;  %v2584_v50 = vrot.slane %v2545_v48, 7 }
 0x28b   : > { %2614 = vst [vmem:[%s4042_s29 + $0x50] sm:$0xff] %v2583_v49 }
 0x28c   : > { %v2585_v53 = vsel %vm2567_vm1, %v2573_v43, %v2584_v50  ;;  %2621 = vst [vmem:[%s4042_s29 + $0x88] sm:$0x1] %v2584_v50 }
 0x28d   : > { %2615 = vst [vmem:[%s4042_s29 + $0x58] sm:$0xff] %v2585_v53 }
 0x28e PF: > { %p19_p11 = scmp.ge.s32.totalorder %s3934_s19, 4   ;;  %s4132_s21 = smov %s3789_s22 }
 0x28f   : > { %s4133_s22 = smov %s3793_s23  ;;  %s4134_s23 = smov %s3945_s26 }
 0x290   : > { %s4135_s24 = smov %s3934_s19  ;;  %21 = sbr.rel (!%p19_p11) target bundleno = 6 (0x6), region = 104 }
 0x295   :  { %2643 = vsyncpa [#allocation3], 1 }
 0x296   :  { %2645 = vsyncpa [#allocation3 + $0x1], 1 }
 0x297   :  { %2646 = vsyncpa [#allocation5], 1 }
 0x298   :  { %2647 = vsyncpa [#allocation8], 1 }
 0x299   :  { %2648 = vsyncpa [#allocation11], 1 }

</bundles_post_ra>
